<compile_context>
chip_gen: v7x
topology: tpu7x:2x2x1
jax: 0.10.0
libtpu: 0.0.40
codegen_flags: <defaults>
</compile_context>

<pallas_src>
import math

import jax
import jax.numpy as jnp
from jax.experimental import pallas as pl
from jax.experimental.pallas import tpu as pltpu

_LANES = 128
_SUBLANES = 8
_ROW_QUANTUM = _LANES * _SUBLANES  # 1024 rows -> (8, 128, D) x blocks, (8, 128) out blocks


def logreg_kernel(b_ref, x_ref, w_ref, o_ref):
    # b_ref: (1,) f32 in SMEM
    # x_ref: (TG, 128, D) rows of the batch, lane axis = features
    # w_ref: (1, 1, D)
    # o_ref: (TG, 128) lane-dense output slab
    x = x_ref[...]
    w = w_ref[...]
    # Memory-bound matvec: VPU multiply + cross-lane (XLU) reduce; MXU stays idle on purpose.
    z = jnp.sum(x * w, axis=-1) + b_ref[0]          # (TG, 128), f32 accumulation
    # Sigmoid: exp on the EUP; exact reciprocal keeps the 1e-6 reference tolerance.
    y = pl.reciprocal(1.0 + jnp.exp(-z))
    o_ref[...] = y.astype(o_ref.dtype)


def _round_up(n, m):
    return ((n + m - 1) // m) * m


def logistic_regression(x, w, b):
    """x: (N, D) f32, w: (1, D) f32, b: (1,) f32 -> (N, 1) f32 (== sigmoid(x @ W^T + b))."""
    N, D = x.shape
    itemsize = jnp.dtype(x.dtype).itemsize

    # Rows per grid step: multiple of 1024 (so blocks are (8,128)-aligned), targeting ~4 MiB
    # of x per tile to amortize the ~0.35 us per-step overhead, capped for small N / VMEM.
    target_tile_bytes = 4 * 1024 * 1024
    rows_per_tile = (target_tile_bytes // max(D * itemsize, 1)) // _ROW_QUANTUM * _ROW_QUANTUM
    rows_per_tile = max(_ROW_QUANTUM, min(8 * _ROW_QUANTUM, rows_per_tile))
    rows_per_tile = min(rows_per_tile, _round_up(N, _ROW_QUANTUM))
    # TODO(synk): for very large D (x tile > ~16 MiB even at 1024 rows), add a reduction grid
    # axis over D with a VMEM accumulator (pl.when init / finalize) to bound per-tile VMEM.

    n_pad = _round_up(N, rows_per_tile)
    x_p = jnp.pad(x, ((0, n_pad - N), (0, 0)))

    groups = n_pad // _LANES                 # total 128-row groups
    tg = rows_per_tile // _LANES             # groups per grid step (multiple of 8)
    num_tiles = groups // tg

    x3 = x_p.reshape(groups, _LANES, D)
    w3 = w.reshape(1, 1, D)
    b1 = b.reshape(1)

    x_tile_bytes = rows_per_tile * D * itemsize
    out_tile_bytes = rows_per_tile * 4
    vmem_limit = int(min(100 * 2**20,
                         max(16 * 2**20,
                             4 * (x_tile_bytes + out_tile_bytes) + D * 4 + (1 << 20))))

    out = pl.pallas_call(
        logreg_kernel,
        out_shape=jax.ShapeDtypeStruct((groups, _LANES), jnp.float32),
        grid=(num_tiles,),
        in_specs=[
            pl.BlockSpec(memory_space=pltpu.MemorySpace.SMEM),      # bias scalar
            pl.BlockSpec((tg, _LANES, D), lambda i: (i, 0, 0)),     # x row tile
            pl.BlockSpec((1, 1, D), lambda i: (0, 0, 0)),           # weights (resident)
        ],
        out_specs=pl.BlockSpec((tg, _LANES), lambda i: (i, 0)),     # lane-dense output
        compiler_params=pltpu.CompilerParams(
            dimension_semantics=("parallel",),                      # megacore split on v7x
            vmem_limit_bytes=vmem_limit,
        ),
    )(b1, x3, w3)

    return out.reshape(n_pad, 1)[:N]


if __name__ == "__main__":
    N = 8          # batch
    D = 32         # input_size

    key = jax.random.PRNGKey(0)
    kx, kw, kb = jax.random.split(key, 3)

    # Deterministic inputs / parameters (PyTorch Linear-style uniform init bounds).
    x = jax.random.normal(kx, (N, D), dtype=jnp.float32)
    bound = 1.0 / math.sqrt(D)
    w = jax.random.uniform(kw, (1, D), dtype=jnp.float32, minval=-bound, maxval=bound)
    b = jax.random.uniform(kb, (1,), dtype=jnp.float32, minval=-bound, maxval=bound)

    y = logistic_regression(x, w, b)
    jax.block_until_ready(y)

    # Reference check in plain JAX
    y_ref = jax.nn.sigmoid(x @ w.T + b)
    assert y.shape == (N, 1)
    assert jnp.allclose(y, y_ref, atol=1e-6, rtol=1e-6)

    print("KERNEL_OK")
</pallas_src>

<mosaic_0001>
module attributes {stable_mosaic.version = 11 : i64} {
  func.func @logreg_kernel(%arg0: i32, %arg1: memref<1xf32, #tpu.memory_space<smem>>, %arg2: memref<8x128x32xf32, #tpu.memory_space<vmem>>, %arg3: memref<1x1x32xf32, #tpu.memory_space<vmem>>, %arg4: memref<8x128xf32, #tpu.memory_space<vmem>>) attributes {dimension_semantics = [#tpu.dimension_semantics<parallel>], iteration_bounds = array<i64: 1>, scalar_prefetch = 0 : i64, scratch_operands = 0 : i64, tpu.core_type = #tpu.core_type<tc>, window_params = [{transform_indices = @transform_0, window_bounds = array<i64: 1>}, {transform_indices = @transform_1, window_bounds = array<i64: 8, 128, 32>}, {pipeline_mode = #tpu.pipeline_mode<synchronous>, transform_indices = @transform_2, window_bounds = array<i64: 1, 1, 32>}, {transform_indices = @transform_3, window_bounds = array<i64: 8, 128>}]} {
    %c0 = arith.constant 0 : index
    %c0_0 = arith.constant 0 : index
    %c0_1 = arith.constant 0 : index
    %0 = vector.load %arg2[%c0, %c0_0, %c0_1] : memref<8x128x32xf32, #tpu.memory_space<vmem>>, vector<8x128x32xf32>
    %c0_2 = arith.constant 0 : index
    %c0_3 = arith.constant 0 : index
    %c0_4 = arith.constant 0 : index
    %1 = vector.load %arg3[%c0_2, %c0_3, %c0_4] : memref<1x1x32xf32, #tpu.memory_space<vmem>>, vector<1x1x32xf32>
    %2 = vector.broadcast %1 : vector<1x1x32xf32> to vector<8x128x32xf32>
    %3 = arith.mulf %0, %2 : vector<8x128x32xf32>
    %cst = arith.constant dense<0.000000e+00> : vector<8x128xf32>
    %4 = vector.multi_reduction <add>, %3, %cst [2] : vector<8x128x32xf32> to vector<8x128xf32>
    %c0_5 = arith.constant 0 : index
    %5 = memref.load %arg1[%c0_5] : memref<1xf32, #tpu.memory_space<smem>>
    %6 = vector.broadcast %5 : f32 to vector<8x128xf32>
    %7 = arith.addf %4, %6 : vector<8x128xf32>
    %cst_6 = arith.constant 0.000000e+00 : f32
    %8 = vector.broadcast %cst_6 : f32 to vector<8x128xf32>
    %9 = arith.subf %8, %7 : vector<8x128xf32>
    %10 = math.exp %9 : vector<8x128xf32>
    %cst_7 = arith.constant 1.000000e+00 : f32
    %11 = vector.broadcast %cst_7 : f32 to vector<8x128xf32>
    %12 = arith.addf %11, %10 : vector<8x128xf32>
    %13 = tpu.reciprocal %12 : vector<8x128xf32> -> vector<8x128xf32>
    %c0_8 = arith.constant 0 : index
    %c0_9 = arith.constant 0 : index
    %14 = vector.load %arg4[%c0_8, %c0_9] : memref<8x128xf32, #tpu.memory_space<vmem>>, vector<8x128xf32>
    tpu.vector_store %arg4[%c0_8, %c0_9], %13 {strides = array<i32>} : memref<8x128xf32, #tpu.memory_space<vmem>>, vector<8x128xf32>,
    return
  }
  func.func @transform_0(%arg0: i32) -> i32 {
    %c0_i32 = arith.constant 0 : i32
    %c0_i32_0 = arith.constant 0 : i32
    return %c0_i32 : i32
  }
  func.func @transform_1(%arg0: i32) -> (i32, i32, i32) {
    %c0_i32 = arith.constant 0 : i32
    %c0_i32_0 = arith.constant 0 : i32
    %c0_i32_1 = arith.constant 0 : i32
    return %arg0, %c0_i32, %c0_i32_0 : i32, i32, i32
  }
  func.func @transform_2(%arg0: i32) -> (i32, i32, i32) {
    %c0_i32 = arith.constant 0 : i32
    %c0_i32_0 = arith.constant 0 : i32
    %c0_i32_1 = arith.constant 0 : i32
    %c0_i32_2 = arith.constant 0 : i32
    return %c0_i32, %c0_i32_0, %c0_i32_1 : i32, i32, i32
  }
  func.func @transform_3(%arg0: i32) -> (i32, i32) {
    %c0_i32 = arith.constant 0 : i32
    %c0_i32_0 = arith.constant 0 : i32
    return %arg0, %c0_i32 : i32, i32
  }
}

</mosaic_0001>

<bundles_post_ra>
// kernel: tpu_custom_call.1
= control target key start
LH: loop header
LB: loop body
LE: loop exit
PB: predicated region body
PF: predicated region fallthrough
CT: control target
= control target key end

     0   :  { %vm279_vm0 = vcmask 261120   ;;  %s4284_s0 = inlined_call_operand.<no memory space> [shape: f32[1], index: 0, kind: input, shape index: {}]   ;;  %s4285_s1 = inlined_call_operand.vmem [shape: f32[8,128,32], index: 1, kind: input, shape index: {}]   ;;  %s4286_s2 = inlined_call_operand.vmem [shape: f32[1,1,32], index: 2, kind: input, shape index: {}]   ;;  %s4287_s3 = inlined_call_operand.hbm [shape: f32[8,128], index: 3, kind: output, shape index: {}]  }
   0x1   :  { %v18_v0 = vld [vmem:[%s4285_s1 + $0x10] sm:$0xff]  ;;  %v2822_v1 = vld [vmem:[%s4286_s2] ss:$0 sm:$0xff]  ;;  %v19_v5 = vld [vmem:[%s4285_s1 + $0x18] sm:$0xff] }
   0x2   :  { %v16_v2 = vld [vmem:[%s4285_s1] sm:$0xff]  ;;  %v153_v3 = vmul.f32 %v2822_v1, %v18_v0  ;;  %v17_v6 = vld [vmem:[%s4285_s1 + $0x8] sm:$0xff]  ;;  %v154_v7 = vmul.f32 %v2822_v1, %v19_v5  ;;  %v23_v17 = vld [vmem:[%s4285_s1 + $0x38] sm:$0xff] }
   0x3   :  { %v151_v4 = vmul.f32 %v2822_v1, %v16_v2  ;;  %v152_v8 = vmul.f32 %v2822_v1, %v17_v6  ;;  %v21_v9 = vld [vmem:[%s4285_s1 + $0x28] sm:$0xff]  ;;  %v20_v10 = vld [vmem:[%s4285_s1 + $0x20] sm:$0xff]  ;;  %v22_v18 = vld [vmem:[%s4285_s1 + $0x30] sm:$0xff]  ;;  %v158_v21 = vmul.f32 %v2822_v1, %v23_v17 }
   0x4   :  { %v286_v11 = vsel %vm279_vm0, %v153_v3, 0.0  ;;  %v289_v13 = vsel %vm279_vm0, %v154_v7, 0.0  ;;  %v156_v15 = vmul.f32 %v2822_v1, %v21_v9  ;;  %v155_v16 = vmul.f32 %v2822_v1, %v20_v10  ;;  %v25_v23 = vld [vmem:[%s4285_s1 + $0x48] sm:$0xff]  ;;  %v24_v24 = vld [vmem:[%s4285_s1 + $0x40] sm:$0xff]  ;;  %v27_v29 = vld [vmem:[%s4285_s1 + $0x58] sm:$0xff] }
   0x5   :  { %v280_v12 = vsel %vm279_vm0, %v151_v4, 0.0  ;;  %287 = vadd.xlane.f32.xlu1 %v286_v11  ;;  %v283_v14 = vsel %vm279_vm0, %v152_v8, 0.0  ;;  %v157_v22 = vmul.f32 %v2822_v1, %v22_v18  ;;  %v301_v25 = vsel %vm279_vm0, %v158_v21, 0.0  ;;  %v26_v30 = vld [vmem:[%s4285_s1 + $0x50] sm:$0xff]  ;;  %v29_v35 = vld [vmem:[%s4285_s1 + $0x68] sm:$0xff]  ;;  %v28_v36 = vld [vmem:[%s4285_s1 + $0x60] sm:$0xff] }
   0x6   :  { %281 = vadd.xlane.f32.xlu0 %v280_v12  ;;  %v295_v19 = vsel %vm279_vm0, %v156_v15, 0.0  ;;  %v292_v20 = vsel %vm279_vm0, %v155_v16, 0.0  ;;  %v160_v27 = vmul.f32 %v2822_v1, %v25_v23  ;;  %v159_v28 = vmul.f32 %v2822_v1, %v24_v24  ;;  %v31_v41 = vld [vmem:[%s4285_s1 + $0x78] sm:$0xff]  ;;  %v30_v42 = vld [vmem:[%s4285_s1 + $0x70] sm:$0xff]  ;;  %v33_v47 = vld [vmem:[%s4285_s1 + $0x88] sm:$0xff] }
   0x7   :  { %v298_v26 = vsel %vm279_vm0, %v157_v22, 0.0  ;;  %v162_v33 = vmul.f32 %v2822_v1, %v27_v29  ;;  %v161_v34 = vmul.f32 %v2822_v1, %v26_v30  ;;  %v164_v39 = vmul.f32 %v2822_v1, %v29_v35  ;;  %v32_v48 = vld [vmem:[%s4285_s1 + $0x80] sm:$0xff] }
   0x8   :  { %v307_v31 = vsel %vm279_vm0, %v160_v27, 0.0  ;;  %v304_v32 = vsel %vm279_vm0, %v159_v28, 0.0  ;;  %v163_v40 = vmul.f32 %v2822_v1, %v28_v36  ;;  %v166_v45 = vmul.f32 %v2822_v1, %v31_v41 }
   0x9   :  { %290 = vadd.xlane.f32.xlu1 %v289_v13  ;;  %v313_v37 = vsel %vm279_vm0, %v162_v33, 0.0  ;;  %v310_v38 = vsel %vm279_vm0, %v161_v34, 0.0  ;;  %v319_v43 = vsel %vm279_vm0, %v164_v39, 0.0  ;;  %v165_v46 = vmul.f32 %v2822_v1, %v30_v42 }
   0xa   :  { %284 = vadd.xlane.f32.xlu0 %v283_v14  ;;  %v316_v44 = vsel %vm279_vm0, %v163_v40, 0.0 }
   0xd   :  { %296 = vadd.xlane.f32.xlu1 %v295_v19 }
   0xe   :  { %293 = vadd.xlane.f32.xlu0 %v292_v20 }
  0x11   :  { %302 = vadd.xlane.f32.xlu1 %v301_v25 }
  0x12   :  { %299 = vadd.xlane.f32.xlu0 %v298_v26 }
  0x15   :  { %308 = vadd.xlane.f32.xlu1 %v307_v31 }
  0x16   :  { %305 = vadd.xlane.f32.xlu0 %v304_v32 }
  0x19   :  { %314 = vadd.xlane.f32.xlu1 %v313_v37 }
  0x1a   :  { %311 = vadd.xlane.f32.xlu0 %v310_v38 }
  0x1b   :  { %9 = vsyncpa [#allocation4], 0  ;;  %v325_v49 = vsel %vm279_vm0, %v166_v45, 0.0  ;;  %v322_v50 = vsel %vm279_vm0, %v165_v46, 0.0  ;;  %v168_v51 = vmul.f32 %v2822_v1, %v33_v47  ;;  %v167_v52 = vmul.f32 %v2822_v1, %v32_v48  ;;  %v35_v53 = vld [vmem:[%s4285_s1 + $0x98] sm:$0xff]  ;;  %v34_v54 = vld [vmem:[%s4285_s1 + $0x90] sm:$0xff] }
  0x1c   :  { %v170_v57 = vmul.f32 %v2822_v1, %v35_v53  ;;  %v169_v58 = vmul.f32 %v2822_v1, %v34_v54  ;;  %v37_v59 = vld [vmem:[%s4285_s1 + $0xa8] sm:$0xff]  ;;  %v36_v60 = vld [vmem:[%s4285_s1 + $0xa0] sm:$0xff]  ;;  %v39_v2 = vld [vmem:[%s4285_s1 + $0xb8] sm:$0xff]  ;;  %vm1573_vm1 = vcmask 130112   ;;  %vm1580_vm2 = vcmask 195712  }
  0x1d   :  { %320 = vadd.xlane.f32.xlu1 %v319_v43  ;;  %v331_v55 = vsel %vm279_vm0, %v168_v51, 0.0  ;;  %v328_v56 = vsel %vm279_vm0, %v167_v52, 0.0  ;;  %v172_v63 = vmul.f32 %v2822_v1, %v37_v59  ;;  %v171_v0 = vmul.f32 %v2822_v1, %v36_v60  ;;  %v38_v3 = vld [vmem:[%s4285_s1 + $0xb0] sm:$0xff]  ;;  %v41_v8 = vld [vmem:[%s4285_s1 + $0xc8] sm:$0xff]  ;;  %v40_v9 = vld [vmem:[%s4285_s1 + $0xc0] sm:$0xff] }
  0x1e   :  { %317 = vadd.xlane.f32.xlu0 %v316_v44  ;;  %v337_v61 = vsel %vm279_vm0, %v170_v57, 0.0  ;;  %v334_v62 = vsel %vm279_vm0, %v169_v58, 0.0  ;;  %v174_v6 = vmul.f32 %v2822_v1, %v39_v2  ;;  %v173_v7 = vmul.f32 %v2822_v1, %v38_v3  ;;  %v43_v14 = vld [vmem:[%s4285_s1 + $0xd8] sm:$0xff]  ;;  %v42_v15 = vld [vmem:[%s4285_s1 + $0xd0] sm:$0xff]  ;;  %v45_v20 = vld [vmem:[%s4285_s1 + $0xe8] sm:$0xff] }
  0x1f   :  { %v343_v4 = vsel %vm279_vm0, %v172_v63, 0.0  ;;  %v340_v5 = vsel %vm279_vm0, %v171_v0, 0.0  ;;  %v176_v12 = vmul.f32 %v2822_v1, %v41_v8  ;;  %v175_v13 = vmul.f32 %v2822_v1, %v40_v9  ;;  %v44_v21 = vld [vmem:[%s4285_s1 + $0xe0] sm:$0xff]  ;;  %v47_v26 = vld [vmem:[%s4285_s1 + $0xf8] sm:$0xff]  ;;  %v46_v27 = vld [vmem:[%s4285_s1 + $0xf0] sm:$0xff] }
  0x20   :  { %v349_v10 = vsel %vm279_vm0, %v174_v6, 0.0  ;;  %v346_v11 = vsel %vm279_vm0, %v173_v7, 0.0  ;;  %v178_v18 = vmul.f32 %v2822_v1, %v43_v14  ;;  %v177_v19 = vmul.f32 %v2822_v1, %v42_v15  ;;  %v49_v32 = vld [vmem:[%s4285_s1 + $0x108] sm:$0xff]  ;;  %v48_v33 = vld [vmem:[%s4285_s1 + $0x100] sm:$0xff]  ;;  %v51_v38 = vld [vmem:[%s4285_s1 + $0x118] sm:$0xff] }
  0x21   :  { %326 = vadd.xlane.f32.xlu1 %v325_v49  ;;  %v355_v16 = vsel %vm279_vm0, %v176_v12, 0.0  ;;  %v352_v17 = vsel %vm279_vm0, %v175_v13, 0.0  ;;  %v180_v24 = vmul.f32 %v2822_v1, %v45_v20  ;;  %v179_v25 = vmul.f32 %v2822_v1, %v44_v21  ;;  %v50_v39 = vld [vmem:[%s4285_s1 + $0x110] sm:$0xff]  ;;  %v53_v44 = vld [vmem:[%s4285_s1 + $0x128] sm:$0xff]  ;;  %v52_v45 = vld [vmem:[%s4285_s1 + $0x120] sm:$0xff] }
  0x22   :  { %323 = vadd.xlane.f32.xlu0 %v322_v50  ;;  %v361_v22 = vsel %vm279_vm0, %v178_v18, 0.0  ;;  %v358_v23 = vsel %vm279_vm0, %v177_v19, 0.0  ;;  %v182_v30 = vmul.f32 %v2822_v1, %v47_v26  ;;  %v181_v31 = vmul.f32 %v2822_v1, %v46_v27  ;;  %v55_v50 = vld [vmem:[%s4285_s1 + $0x138] sm:$0xff]  ;;  %v54_v51 = vld [vmem:[%s4285_s1 + $0x130] sm:$0xff]  ;;  %v56_v57 = vld [vmem:[%s4285_s1 + $0x140] sm:$0xff] }
  0x23   :  { %v367_v28 = vsel %vm279_vm0, %v180_v24, 0.0  ;;  %v364_v29 = vsel %vm279_vm0, %v179_v25, 0.0  ;;  %v184_v36 = vmul.f32 %v2822_v1, %v49_v32  ;;  %v183_v37 = vmul.f32 %v2822_v1, %v48_v33  ;;  %v58_v63 = vld [vmem:[%s4285_s1 + $0x150] sm:$0xff]  ;;  %v60_v6 = vld [vmem:[%s4285_s1 + $0x160] sm:$0xff] }
  0x24   :  { %v373_v34 = vsel %vm279_vm0, %v182_v30, 0.0  ;;  %v370_v35 = vsel %vm279_vm0, %v181_v31, 0.0  ;;  %v186_v42 = vmul.f32 %v2822_v1, %v51_v38  ;;  %v185_v43 = vmul.f32 %v2822_v1, %v50_v39  ;;  %v62_v12 = vld [vmem:[%s4285_s1 + $0x170] sm:$0xff]  ;;  %v64_v18 = vld [vmem:[%s4285_s1 + $0x180] sm:$0xff] }
  0x25   :  { %332 = vadd.xlane.f32.xlu1 %v331_v55  ;;  %v379_v40 = vsel %vm279_vm0, %v184_v36, 0.0  ;;  %v376_v41 = vsel %vm279_vm0, %v183_v37, 0.0  ;;  %v188_v48 = vmul.f32 %v2822_v1, %v53_v44  ;;  %v187_v49 = vmul.f32 %v2822_v1, %v52_v45  ;;  %v66_v24 = vld [vmem:[%s4285_s1 + $0x190] sm:$0xff]  ;;  %v68_v30 = vld [vmem:[%s4285_s1 + $0x1a0] sm:$0xff] }
  0x26   :  { %329 = vadd.xlane.f32.xlu0 %v328_v56  ;;  %v385_v46 = vsel %vm279_vm0, %v186_v42, 0.0  ;;  %v382_v47 = vsel %vm279_vm0, %v185_v43, 0.0  ;;  %v190_v54 = vmul.f32 %v2822_v1, %v55_v50  ;;  %v189_v55 = vmul.f32 %v2822_v1, %v54_v51  ;;  %v57_v56 = vld [vmem:[%s4285_s1 + $0x148] sm:$0xff]  ;;  %v70_v36 = vld [vmem:[%s4285_s1 + $0x1b0] sm:$0xff]  ;;  %v72_v42 = vld [vmem:[%s4285_s1 + $0x1c0] sm:$0xff] }
  0x27   :  { %v391_v52 = vsel %vm279_vm0, %v188_v48, 0.0  ;;  %v388_v53 = vsel %vm279_vm0, %v187_v49, 0.0  ;;  %v192_v60 = vmul.f32 %v2822_v1, %v57_v56  ;;  %v74_v48 = vld [vmem:[%s4285_s1 + $0x1d0] sm:$0xff]  ;;  %v79_v56 = vld [vmem:[%s4285_s1 + $0x1f8] sm:$0xff]  ;;  %vm1587_vm3 = vcmask 261312  }
  0x28   :  { %v397_v58 = vsel %vm279_vm0, %v190_v54, 0.0  ;;  %v394_v59 = vsel %vm279_vm0, %v189_v55, 0.0  ;;  %v76_v54 = vld [vmem:[%s4285_s1 + $0x1e0] sm:$0xff]  ;;  %vm1594_vm4 = vcmask 326912   ;;  %vm1601_vm5 = vcmask 392512  }
  0x29   :  { %338 = vadd.xlane.f32.xlu1 %v337_v61  ;;  %v191_v61 = vmul.f32 %v2822_v1, %v56_v57  ;;  %v403_v0 = vsel %vm279_vm0, %v192_v60, 0.0  ;;  %v78_v57 = vld [vmem:[%s4285_s1 + $0x1f0] sm:$0xff]  ;;  %v211_v60 = vmul.f32 %v2822_v1, %v76_v54  ;;  %vm1608_vm6 = vcmask 458112  }
  0x2a   :  { %335 = vadd.xlane.f32.xlu0 %v334_v62  ;;  %v59_v62 = vld [vmem:[%s4285_s1 + $0x158] sm:$0xff]  ;;  %vm1615_vm7 = vcmask 523712   ;;  %vm1622_vm8 = vcmask 589312   ;;  %vm1629_vm9 = vcmask 654912   ;;  %vm1636_vm10 = vcmask 720512  }
  0x2b   :  { %v400_v2 = vsel %vm279_vm0, %v191_v61, 0.0  ;;  %v194_v3 = vmul.f32 %v2822_v1, %v59_v62  ;;  %v81_v61 = vld [vmem:[%s4285_s1 + $0x208] sm:$0xff]  ;;  %v80_v62 = vld [vmem:[%s4285_s1 + $0x200] sm:$0xff]  ;;  %vm1643_vm11 = vcmask 786112   ;;  %vm1650_vm12 = vcmask 851712  }
  0x2c   :  { %vm1657_vm13 = vcmask 917312   ;;  %vm1664_vm14 = vcmask 982912   ;;  %vm1671_vm15 = vcmask 1048512  }
  0x2d   :  { %344 = vadd.xlane.f32.xlu1 %v343_v4  ;;  %v193_v4 = vmul.f32 %v2822_v1, %v58_v63  ;;  %v409_v7 = vsel %vm279_vm0, %v194_v3, 0.0  ;;  %v96_v63 = vld [vmem:[%s4285_s1 + $0x280] sm:$0xff]  ;;  %v214_v3 = vmul.f32 %v2822_v1, %v79_v56 }
  0x2e   :  { %341 = vadd.xlane.f32.xlu0 %v340_v5  ;;  %v61_v5 = vld [vmem:[%s4285_s1 + $0x168] sm:$0xff] }
  0x2f   :  { %v406_v8 = vsel %vm279_vm0, %v193_v4, 0.0  ;;  %v196_v9 = vmul.f32 %v2822_v1, %v61_v5  ;;  %v213_v4 = vmul.f32 %v2822_v1, %v78_v57  ;;  %v97_v5 = vld [vmem:[%s4285_s1 + $0x288] sm:$0xff] }
  0x31   :  { %350 = vadd.xlane.f32.xlu1 %v349_v10  ;;  %v195_v10 = vmul.f32 %v2822_v1, %v60_v6  ;;  %v415_v13 = vsel %vm279_vm0, %v196_v9, 0.0  ;;  %v112_v6 = vld [vmem:[%s4285_s1 + $0x300] sm:$0xff]  ;;  %v216_v9 = vmul.f32 %v2822_v1, %v81_v61 }
  0x32   :  { %347 = vadd.xlane.f32.xlu0 %v346_v11  ;;  %v63_v11 = vld [vmem:[%s4285_s1 + $0x178] sm:$0xff] }
  0x33   :  { %v412_v14 = vsel %vm279_vm0, %v195_v10, 0.0  ;;  %v198_v15 = vmul.f32 %v2822_v1, %v63_v11  ;;  %v215_v10 = vmul.f32 %v2822_v1, %v80_v62  ;;  %v460_v11 = vsel %vm279_vm0, %v211_v60, 0.0  ;;  %v87_v60 = vld [vmem:[%s4285_s1 + $0x238] sm:$0xff] }
  0x35   :  { %356 = vadd.xlane.f32.xlu1 %v355_v16  ;;  %v197_v16 = vmul.f32 %v2822_v1, %v62_v12  ;;  %v421_v19 = vsel %vm279_vm0, %v198_v15, 0.0  ;;  %v231_v12 = vmul.f32 %v2822_v1, %v96_v63  ;;  %v98_v15 = vld [vmem:[%s4285_s1 + $0x290] sm:$0xff] }
  0x36   :  { %353 = vadd.xlane.f32.xlu0 %v352_v17  ;;  %v65_v17 = vld [vmem:[%s4285_s1 + $0x188] sm:$0xff] }
  0x37   :  { %v418_v20 = vsel %vm279_vm0, %v197_v16, 0.0  ;;  %v200_v21 = vmul.f32 %v2822_v1, %v65_v17  ;;  %v84_v16 = vld [vmem:[%s4285_s1 + $0x220] sm:$0xff]  ;;  %v232_v17 = vmul.f32 %v2822_v1, %v97_v5 }
  0x39   :  { %362 = vadd.xlane.f32.xlu1 %v361_v22  ;;  %v199_v22 = vmul.f32 %v2822_v1, %v64_v18  ;;  %v427_v25 = vsel %vm279_vm0, %v200_v21, 0.0  ;;  %v247_v18 = vmul.f32 %v2822_v1, %v112_v6  ;;  %v466_v21 = vsel %vm279_vm0, %v213_v4, 0.0  ;;  %v132_v6 = vld [vmem:[%s4285_s1 + $0x3a0] sm:$0xff] }
  0x3a   :  { %359 = vadd.xlane.f32.xlu0 %v358_v23  ;;  %v67_v23 = vld [vmem:[%s4285_s1 + $0x198] sm:$0xff] }
  0x3b   :  { %v424_v26 = vsel %vm279_vm0, %v199_v22, 0.0  ;;  %v202_v27 = vmul.f32 %v2822_v1, %v67_v23  ;;  %v114_v23 = vld [vmem:[%s4285_s1 + $0x310] sm:$0xff] }
  0x3d   :  { %368 = vadd.xlane.f32.xlu1 %v367_v28  ;;  %v201_v28 = vmul.f32 %v2822_v1, %v66_v24  ;;  %v433_v31 = vsel %vm279_vm0, %v202_v27, 0.0  ;;  %v99_v24 = vld [vmem:[%s4285_s1 + $0x298] sm:$0xff]  ;;  %v233_v27 = vmul.f32 %v2822_v1, %v98_v15 }
  0x3e   :  { %365 = vadd.xlane.f32.xlu0 %v364_v29  ;;  %v69_v29 = vld [vmem:[%s4285_s1 + $0x1a8] sm:$0xff] }
  0x3f   :  { %v430_v32 = vsel %vm279_vm0, %v201_v28, 0.0  ;;  %v204_v33 = vmul.f32 %v2822_v1, %v69_v29  ;;  %v219_v28 = vmul.f32 %v2822_v1, %v84_v16  ;;  %v129_v29 = vld [vmem:[%s4285_s1 + $0x388] sm:$0xff] }
  0x41   :  { %374 = vadd.xlane.f32.xlu1 %v373_v34  ;;  %v203_v34 = vmul.f32 %v2822_v1, %v68_v30  ;;  %v439_v37 = vsel %vm279_vm0, %v204_v33, 0.0  ;;  %v128_v30 = vld [vmem:[%s4285_s1 + $0x380] sm:$0xff] }
  0x42   :  { %371 = vadd.xlane.f32.xlu0 %v370_v35  ;;  %v71_v35 = vld [vmem:[%s4285_s1 + $0x1b8] sm:$0xff] }
  0x43   :  { %v436_v38 = vsel %vm279_vm0, %v203_v34, 0.0  ;;  %v206_v39 = vmul.f32 %v2822_v1, %v71_v35  ;;  %v100_v35 = vld [vmem:[%s4285_s1 + $0x2a0] sm:$0xff] }
  0x45   :  { %380 = vadd.xlane.f32.xlu1 %v379_v40  ;;  %v205_v40 = vmul.f32 %v2822_v1, %v70_v36  ;;  %v445_v43 = vsel %vm279_vm0, %v206_v39, 0.0  ;;  %v3206_v36 = vsel %vm279_vm0, %v232_v17, 0.0  ;;  %v234_v39 = vmul.f32 %v2822_v1, %v99_v24 }
  0x46   :  { %377 = vadd.xlane.f32.xlu0 %v376_v41  ;;  %v73_v41 = vld [vmem:[%s4285_s1 + $0x1c8] sm:$0xff] }
  0x47   :  { %v442_v44 = vsel %vm279_vm0, %v205_v40, 0.0  ;;  %v208_v45 = vmul.f32 %v2822_v1, %v73_v41  ;;  %v85_v40 = vld [vmem:[%s4285_s1 + $0x228] sm:$0xff]  ;;  %v130_v41 = vld [vmem:[%s4285_s1 + $0x390] sm:$0xff]  ;;  %v3267_v62 = vsel %vm279_vm0, %v234_v39, 0.0 }
  0x48   :  { %v265_v56 = vmul.f32 %v2822_v1, %v130_v41  ;;  %v89_v41 = vld [vmem:[%s4285_s1 + $0x248] sm:$0xff] }
  0x49   :  { %386 = vadd.xlane.f32.xlu1 %v385_v46  ;;  %v207_v46 = vmul.f32 %v2822_v1, %v72_v42  ;;  %v451_v49 = vsel %vm279_vm0, %v208_v45, 0.0  ;;  %v115_v42 = vld [vmem:[%s4285_s1 + $0x318] sm:$0xff]  ;;  %v264_v45 = vmul.f32 %v2822_v1, %v129_v29 }
  0x4a   :  { %383 = vadd.xlane.f32.xlu0 %v382_v47  ;;  %v75_v47 = vld [vmem:[%s4285_s1 + $0x1d8] sm:$0xff]  ;;  %v250_v57 = vmul.f32 %v2822_v1, %v115_v42 }
  0x4b   :  { %v448_v50 = vsel %vm279_vm0, %v207_v46, 0.0  ;;  %v210_v51 = vmul.f32 %v2822_v1, %v75_v47  ;;  %v263_v46 = vmul.f32 %v2822_v1, %v128_v30  ;;  %v101_v47 = vld [vmem:[%s4285_s1 + $0x2a8] sm:$0xff] }
  0x4c   :  { %v236_v63 = vmul.f32 %v2822_v1, %v101_v47  ;;  %v3301_v15 = vsel %vm279_vm0, %v250_v57, 0.0 }
  0x4d   :  { %392 = vadd.xlane.f32.xlu1 %v391_v52  ;;  %v209_v52 = vmul.f32 %v2822_v1, %v74_v48  ;;  %v86_v48 = vld [vmem:[%s4285_s1 + $0x230] sm:$0xff]  ;;  %v3278_v4 = vsel %vm279_vm0, %v263_v46, 0.0 }
  0x4e   :  { %389 = vadd.xlane.f32.xlu0 %v388_v53  ;;  %v77_v53 = vld [vmem:[%s4285_s1 + $0x1e8] sm:$0xff]  ;;  %v3305_v17 = vsel %vm279_vm0, %v236_v63, 0.0 }
  0x4f   :  { %v212_v55 = vmul.f32 %v2822_v1, %v77_v53  ;;  %v131_v53 = vld [vmem:[%s4285_s1 + $0x398] sm:$0xff] }
  0x50   :  { %v266_v5 = vmul.f32 %v2822_v1, %v131_v53 }
  0x51   :  { %398 = vadd.xlane.f32.xlu1 %v397_v58  ;;  %v457_v58 = vsel %vm279_vm0, %v210_v51, 0.0  ;;  %v3242_v51 = vsel %vm279_vm0, %v219_v28, 0.0 }
  0x52   :  { %395 = vadd.xlane.f32.xlu0 %v394_v59  ;;  %v454_v59 = vsel %vm279_vm0, %v209_v52, 0.0  ;;  %v235_v52 = vmul.f32 %v2822_v1, %v100_v35  ;;  %v118_v35 = vld [vmem:[%s4285_s1 + $0x330] sm:$0xff] }
  0x53   :  { %v253_v53 = vmul.f32 %v2822_v1, %v118_v35 }
  0x55   :  { %404 = vadd.xlane.f32.xlu1 %v403_v0  ;;  %v82_v0 = vld [vmem:[%s4285_s1 + $0x210] sm:$0xff] }
  0x56   :  { %401 = vadd.xlane.f32.xlu0 %v400_v2  ;;  %v83_v2 = vld [vmem:[%s4285_s1 + $0x218] sm:$0xff] }
  0x59   :  { %410 = vadd.xlane.f32.xlu1 %v409_v7  ;;  %v1562_v7 = vlaneseq }
  0x5a   :  { %407 = vadd.xlane.f32.xlu0 %v406_v8  ;;  %v463_v8 = vsel %vm279_vm0, %v212_v55, 0.0  ;;  %v220_v55 = vmul.f32 %v2822_v1, %v85_v40  ;;  %v104_v40 = vld [vmem:[%s4285_s1 + $0x2c0] sm:$0xff] }
  0x5b   :  { %v3178_v22 = vand.u32 127, %v1562_v7 }
  0x5d   :  { %416 = vadd.xlane.f32.xlu1 %v415_v13  ;;  %v217_v13 = vmul.f32 %v2822_v1, %v82_v0  ;;  %v221_v0 = vmul.f32 %v2822_v1, %v86_v48  ;;  %v1568_v16 = vadd.s32 4294967288, %v3178_v22  ;;  %v1589_v24 = vadd.s32 4294967264, %v3178_v22 }
  0x5e   :  { %413 = vadd.xlane.f32.xlu0 %v412_v14  ;;  %v218_v14 = vmul.f32 %v2822_v1, %v83_v2  ;;  %v1596_v28 = vadd.s32 4294967256, %v3178_v22  ;;  %v1617_v48 = vadd.s32 4294967232, %v3178_v22  ;;  %v1624_v57 = vadd.s32 4294967224, %v3178_v22 }
  0x60   :  { %v3199_v33 = vsel %vm279_vm0, %v218_v14, 0.0  ;;  %v3298_v14 = vsel %vm279_vm0, %v265_v56, 0.0 }
  0x61   :  { %422 = vadd.xlane.f32.xlu1 %v421_v19  ;;  %v113_v19 = vld [vmem:[%s4285_s1 + $0x308] sm:$0xff] }
  0x62   :  { %419 = vadd.xlane.f32.xlu0 %v418_v20  ;;  %v469_v20 = vsel %vm279_vm0, %v214_v3, 0.0  ;;  %v248_v34 = vmul.f32 %v2822_v1, %v113_v19  ;;  %v3275_v3 = vsel %vm279_vm0, %v264_v45, 0.0  ;;  %v267_v19 = vmul.f32 %v2822_v1, %v132_v6 }
  0x63   :  { %v1638_v6 = vadd.s32 4294967208, %v3178_v22 }
  0x64   :  { %v3249_v54 = vsel %vm279_vm0, %v248_v34, 0.0  ;;  %v3359_v45 = vsel %vm279_vm0, %v267_v19, 0.0  ;;  %v3413_v19 = vsel %vm279_vm0, %v253_v53, 0.0  ;;  %v106_v53 = vld [vmem:[%s4285_s1 + $0x2d0] sm:$0xff] }
  0x65   :  { %428 = vadd.xlane.f32.xlu1 %v427_v25  ;;  %v475_v25 = vsel %vm279_vm0, %v216_v9, 0.0 }
  0x66   :  { %425 = vadd.xlane.f32.xlu0 %v424_v26  ;;  %v472_v26 = vsel %vm279_vm0, %v215_v10, 0.0  ;;  %v222_v10 = vmul.f32 %v2822_v1, %v87_v60  ;;  %v119_v60 = vld [vmem:[%s4285_s1 + $0x338] sm:$0xff] }
  0x68   :  { %v3337_v34 = vsel %vm279_vm0, %v222_v10, 0.0  ;;  %v105_v10 = vld [vmem:[%s4285_s1 + $0x2c8] sm:$0xff] }
  0x69   :  { %434 = vadd.xlane.f32.xlu1 %v433_v31  ;;  %v520_v31 = vsel %vm279_vm0, %v231_v12, 0.0  ;;  %v1582_v12 = vadd.s32 4294967272, %v3178_v22 }
  0x6a   :  { %431 = vadd.xlane.f32.xlu0 %v430_v32  ;;  %v478_v32 = vsel %vm279_vm0, %v217_v13, 0.0  ;;  %v3295_v13 = vsel %vm279_vm0, %v220_v55, 0.0  ;;  %v134_v55 = vld [vmem:[%s4285_s1 + $0x3b0] sm:$0xff] }
  0x6d   :  { %440 = vadd.xlane.f32.xlu1 %v439_v37  ;;  %v3209_v37 = vsel %vm279_vm0, %v247_v18, 0.0  ;;  %v3308_v18 = vsel %vm279_vm0, %v221_v0, 0.0 }
  0x6e   :  { %437 = vadd.xlane.f32.xlu0 %v436_v38  ;;  %v249_v38 = vmul.f32 %v2822_v1, %v114_v23 }
  0x70   :  { %v3264_v61 = vsel %vm279_vm0, %v249_v38, 0.0 }
  0x71   :  { %446 = vadd.xlane.f32.xlu1 %v445_v43  ;;  %v3222_v43 = vshrl.u32 %v1562_v7, 7  ;;  %v3285_v7 = vsel %vm279_vm0, %v235_v52, 0.0 }
  0x72   :  { %443 = vadd.xlane.f32.xlu0 %v442_v44  ;;  %v1575_v44 = vadd.s32 4294967280, %v3178_v22 }
  0x73   :  { %v3319_v23 = vsub.s32 %v3178_v22, %v3222_v43  ;;  %v3343_v38 = vsub.s32 %v1582_v12, %v3222_v43  ;;  %v3355_v42 = vsub.s32 %v1568_v16, %v3222_v43  ;;  %v3363_v47 = vsub.s32 %v1589_v24, %v3222_v43 }
  0x74   :  { %v3272_v2 = vsub.s32 %v1575_v44, %v3222_v43  ;;  %v1610_v44 = vadd.s32 4294967240, %v3178_v22  ;;  %v3376_v56 = vsub.s32 %v1596_v28, %v3222_v43  ;;  %v3409_v12 = vsub.s32 %v1617_v48, %v3222_v43  ;;  %v135_v28 = vld [vmem:[%s4285_s1 + $0x3b8] sm:$0xff] }
  0x75   :  { %452 = vadd.xlane.f32.xlu1 %v451_v49  ;;  %v3234_v49 = vsel %vm279_vm0, %v233_v27, 0.0  ;;  %v133_v27 = vld [vmem:[%s4285_s1 + $0x3a8] sm:$0xff]  ;;  %v1645_v16 = vadd.s32 4294967200, %v3178_v22  ;;  %v1652_v24 = vadd.s32 4294967192, %v3178_v22 }
  0x76   :  { %449 = vadd.xlane.f32.xlu0 %v448_v50  ;;  %v3239_v50 = vstv %s4284_s0  ;;  %v268_v46 = vmul.f32 %v2822_v1, %v133_v27 }
  0x79   :  { %458 = vadd.xlane.f32.xlu1 %v457_v58  ;;  %v116_v58 = vld [vmem:[%s4285_s1 + $0x320] sm:$0xff] }
  0x7a   :  { %455 = vadd.xlane.f32.xlu0 %v454_v59  ;;  %v102_v59 = vld [vmem:[%s4285_s1 + $0x2b0] sm:$0xff] }
  0x7b   :  { %v237_v9 = vmul.f32 %v2822_v1, %v102_v59  ;;  %v224_v59 = vmul.f32 %v2822_v1, %v89_v41 }
  0x7d   :  { %464 = vadd.xlane.f32.xlu1 %v463_v8  ;;  %v251_v8 = vmul.f32 %v2822_v1, %v116_v58  ;;  %v3334_v30 = vsel %vm279_vm0, %v237_v9, 0.0  ;;  %v239_v58 = vmul.f32 %v2822_v1, %v104_v40  ;;  %v269_v9 = vmul.f32 %v2822_v1, %v134_v55  ;;  %v120_v40 = vld [vmem:[%s4285_s1 + $0x340] sm:$0xff] }
  0x7e   :  { %461 = vadd.xlane.f32.xlu0 %v460_v11  ;;  %v117_v11 = vld [vmem:[%s4285_s1 + $0x328] sm:$0xff]  ;;  %v3426_v27 = vsel %vm279_vm0, %v224_v59, 0.0  ;;  %v3452_v55 = vsub.s32 %v1645_v16, %v3222_v43  ;;  %v270_v59 = vmul.f32 %v2822_v1, %v135_v28 }
  0x7f   :  { %v3331_v29 = vsel %vm279_vm0, %v251_v8, 0.0  ;;  %v3399_v8 = vsel %vm279_vm0, %v268_v46, 0.0  ;;  %v3443_v46 = vsub.s32 %v1638_v6, %v3222_v43  ;;  %v3446_v48 = vsel %vm279_vm0, %v269_v9, 0.0 }
  0x80   :  { %v3462_v6 = vsub.s32 %v1652_v24, %v3222_v43  ;;  %v255_v9 = vmul.f32 %v2822_v1, %v120_v40  ;;  %v241_v24 = vmul.f32 %v2822_v1, %v106_v53 }
  0x81   :  { %470 = vadd.xlane.f32.xlu1 %v469_v20  ;;  %v103_v20 = vld [vmem:[%s4285_s1 + $0x2b8] sm:$0xff] }
  0x82   :  { %467 = vadd.xlane.f32.xlu0 %v466_v21  ;;  %v88_v21 = vld [vmem:[%s4285_s1 + $0x240] sm:$0xff] }
  0x83   :  { %v223_v39 = vmul.f32 %v2822_v1, %v88_v21  ;;  %v3419_v21 = vsub.s32 %v1624_v57, %v3222_v43  ;;  %v1666_v57 = vadd.s32 4294967176, %v3178_v22 }
  0x85   :  { %476 = vadd.xlane.f32.xlu1 %v475_v25  ;;  %v3323_v25 = vsel %vm279_vm0, %v266_v5, 0.0  ;;  %v3392_v0 = vsel %vm279_vm0, %v223_v39, 0.0  ;;  %v3395_v5 = vsub.s32 %v1610_v44, %v3222_v43 }
  0x86   :  { %473 = vadd.xlane.f32.xlu0 %v472_v26  ;;  %v252_v26 = vmul.f32 %v2822_v1, %v117_v11  ;;  %v90_v11 = vld [vmem:[%s4285_s1 + $0x250] sm:$0xff] }
  0x87   :  { %v225_v39 = vmul.f32 %v2822_v1, %v90_v11 }
  0x88   :  { %v3367_v52 = vsel %vm279_vm0, %v252_v26, 0.0  ;;  %v3423_v26 = vsel %vm279_vm0, %v239_v58, 0.0 }
  0x89   :  { %521 = vadd.xlane.f32.xlu1 %v520_v31  ;;  %v1603_v31 = vadd.s32 4294967248, %v3178_v22 }
  0x8a   :  { %479 = vadd.xlane.f32.xlu0 %v478_v32  ;;  %v238_v32 = vmul.f32 %v2822_v1, %v103_v20  ;;  %v254_v20 = vmul.f32 %v2822_v1, %v119_v60 }
  0x8b   :  { %v3385_v63 = vsub.s32 %v1603_v31, %v3222_v43 }
  0x8c   :  { %v3456_v58 = vsel %vm279_vm0, %v254_v20, 0.0 }
  0x8d   :  { %482 = vadd.xlane.f32.xlu1 %v3199_v33  ;;  %v1631_v33 = vadd.s32 4294967216, %v3178_v22 }
  0x8e   :  { %524 = vadd.xlane.f32.xlu0 %v3206_v36  ;;  %v3389_v36 = vsel %vm279_vm0, %v238_v32, 0.0  ;;  %v240_v32 = vmul.f32 %v2822_v1, %v105_v10  ;;  %v136_v10 = vld [vmem:[%s4285_s1 + $0x3c0] sm:$0xff] }
  0x8f   :  { %v271_v53 = vmul.f32 %v2822_v1, %v136_v10  ;;  %v3509_v10 = vsel %vm279_vm0, %v241_v24, 0.0 }
  0x90   :  { %4288 = vst [vmem:[#allocation6_spill] sm:$0xff] %v3509_v10 }
  0x91   :  { %569 = vadd.xlane.f32.xlu1 %v3209_v37  ;;  %v3432_v37 = vsub.s32 %v1631_v33, %v3222_v43 }
  0x92   :  { %527 = vadd.xlane.f32.xlu0 %v3234_v49  ;;  %v288_v35 = vpop.xlane.xlu1 %287  ;;  %v1659_v49 = vadd.s32 4294967184, %v3178_v22  ;;  %v91_v22 = vld [vmem:[%s4285_s1 + $0x258] sm:$0xff] }
  0x93   :  { %v282_v31 = vpop.xlane.xlu0 %281  ;;  %v668_v41 = vadd.f32 %v3239_v50, %v288_v35 }
  0x94   :  { %v666_v44 = vadd.f32 %v3239_v50, %v282_v31  ;;  %v3472_v20 = vsub.s32 %v1659_v49, %v3222_v43  ;;  %v107_v49 = vld [vmem:[%s4285_s1 + $0x2d8] sm:$0xff] }
  0x95   :  { %v796_v60 = vsub.f32 0.0, %v668_v41  ;;  %485 = vadd.xlane.f32.xlu1 %v3242_v51  ;;  %v3475_v51 = vsel %vm279_vm0, %v240_v32, 0.0  ;;  %v121_v41 = vld [vmem:[%s4285_s1 + $0x348] sm:$0xff]  ;;  %v3490_v32 = vsub.s32 %v1666_v57, %v3222_v43  ;;  %v92_v43 = vld [vmem:[%s4285_s1 + $0x260] sm:$0xff] }
  0x96   :  { %v794_v33 = vsub.f32 0.0, %v666_v44  ;;  %572 = vadd.xlane.f32.xlu0 %v3249_v54  ;;  %v291_v11 = vpop.xlane.xlu1 %290  ;;  %v3478_v54 = vsel %vm279_vm0, %v225_v39, 0.0  ;;  %v3493_v39 = vsel %vm279_vm0, %v270_v59, 0.0  ;;  %v226_v44 = vmul.f32 %v2822_v1, %v91_v22  ;;  %v137_v57 = vld [vmem:[%s4285_s1 + $0x3c8] sm:$0xff] }
  0x97   :  { %v285_v16 = vpop.xlane.xlu0 %284  ;;  %v926_v28 = vmul.f32 1.442695, %v796_v60  ;;  %v669_v31 = vadd.f32 %v3239_v50, %v291_v11  ;;  %v3500_v11 = vsel %vm279_vm0, %v255_v9, 0.0  ;;  %v122_v9 = vld [vmem:[%s4285_s1 + $0x350] sm:$0xff]  ;;  %v272_v10 = vmul.f32 %v2822_v1, %v137_v57 }
  0x98   :  { %v922_v35 = vmul.f32 1.442695, %v794_v33  ;;  %v667_v40 = vadd.f32 %v3239_v50, %v285_v16  ;;  %v3522_v24 = vsel %vm279_vm0, %v226_v44, 0.0  ;;  %v93_v44 = vld [vmem:[%s4285_s1 + $0x268] sm:$0xff] }
  0x99   :  { %2258 = vpow2.f32 %v926_v28  ;;  %v797_v60 = vsub.f32 0.0, %v669_v31  ;;  %575 = vadd.xlane.f32.xlu1 %v3264_v61  ;;  %v256_v61 = vmul.f32 %v2822_v1, %v121_v41  ;;  %v3525_v41 = vsel %vm279_vm0, %v271_v53, 0.0  ;;  %v138_v53 = vld [vmem:[%s4285_s1 + $0x3d0] sm:$0xff] }
  0x9a   :  { %v795_v33 = vsub.f32 0.0, %v667_v40  ;;  %530 = vadd.xlane.f32.xlu0 %v3267_v62  ;;  %2260 = vpow2.f32 %v922_v35  ;;  %v297_v59 = vpop.xlane.xlu1 %296  ;;  %v242_v62 = vmul.f32 %v2822_v1, %v107_v49  ;;  %v108_v35 = vld [vmem:[%s4285_s1 + $0x2e0] sm:$0xff]  ;;  %v227_v49 = vmul.f32 %v2822_v1, %v92_v43 }
  0x9b   :  { %v294_v22 = vpop.xlane.xlu0 %293  ;;  %v928_v16 = vmul.f32 1.442695, %v797_v60  ;;  %v671_v31 = vadd.f32 %v3239_v50, %v297_v59  ;;  %v257_v59 = vmul.f32 %v2822_v1, %v122_v9  ;;  %v123_v9 = vld [vmem:[%s4285_s1 + $0x358] sm:$0xff] }
  0x9c   :  { %v924_v28 = vmul.f32 1.442695, %v795_v33  ;;  %v670_v40 = vadd.f32 %v3239_v50, %v294_v22  ;;  %v3539_v22 = vsel %vm279_vm0, %v256_v61, 0.0  ;;  %v109_v61 = vld [vmem:[%s4285_s1 + $0x2e8] sm:$0xff] }
  0x9d   :  { %2262 = vpow2.f32 %v928_v16  ;;  %v799_v60 = vsub.f32 0.0, %v671_v31  ;;  %620 = vadd.xlane.f32.xlu1 %v3275_v3  ;;  %4289 = vst [vmem:[#allocation7_spill] sm:$0xff] %v3539_v22  ;;  %v3542_v3 = vsel %vm279_vm0, %v242_v62, 0.0  ;;  %v94_v62 = vld [vmem:[%s4285_s1 + $0x270] sm:$0xff]  ;;  %v3567_v22 = vsel %vm279_vm0, %v257_v59, 0.0 }
  0x9e   :  { %v798_v33 = vsub.f32 0.0, %v670_v40  ;;  %617 = vadd.xlane.f32.xlu0 %v3278_v4  ;;  %2264 = vpow2.f32 %v924_v28  ;;  %v303_v43 = vpop.xlane.xlu1 %302  ;;  %4290 = vst [vmem:[#allocation8_spill] sm:$0xff] %v3542_v3  ;;  %v243_v4 = vmul.f32 %v2822_v1, %v108_v35  ;;  %v3557_v35 = vsel %vm279_vm0, %v227_v49, 0.0  ;;  %4293 = vst [vmem:[#allocation11_spill] sm:$0xff] %v3567_v22 }
  0x9f   :  { %v300_v57 = vpop.xlane.xlu0 %299  ;;  %v932_v16 = vmul.f32 1.442695, %v799_v60  ;;  %v673_v40 = vadd.f32 %v3239_v50, %v303_v43  ;;  %4291 = vst [vmem:[#allocation9_spill] sm:$0xff] %v3557_v35  ;;  %v3560_v3 = vsel %vm279_vm0, %v272_v10, 0.0  ;;  %v228_v60 = vmul.f32 %v2822_v1, %v93_v44 }
  0xa0   :  { %v930_v31 = vmul.f32 1.442695, %v798_v33  ;;  %v672_v28 = vadd.f32 %v3239_v50, %v300_v57  ;;  %4292 = vst [vmem:[#allocation10_spill] sm:$0xff] %v3560_v3  ;;  %v273_v33 = vmul.f32 %v2822_v1, %v138_v53  ;;  %v258_v10 = vmul.f32 %v2822_v1, %v123_v9 }
  0xa1   :  { %2266 = vpow2.f32 %v932_v16  ;;  %v801_v43 = vsub.f32 0.0, %v673_v40  ;;  %533 = vadd.xlane.f32.xlu1 %v3285_v7  ;;  %v244_v3 = vmul.f32 %v2822_v1, %v109_v61  ;;  %v229_v44 = vmul.f32 %v2822_v1, %v94_v62  ;;  %v139_v1 = vld [vmem:[%s4285_s1 + $0x3d8] sm:$0xff] }
  0xa2   :  { %v800_v57 = vsub.f32 0.0, %v672_v28  ;;  %488 = vadd.xlane.f32.xlu0 %v3295_v13  ;;  %2268 = vpow2.f32 %v930_v31  ;;  %v309_v49 = vpop.xlane.xlu1 %308  ;;  %v3575_v13 = vsel %vm279_vm0, %v243_v4, 0.0  ;;  %v3578_v22 = vsel %vm279_vm0, %v228_v60, 0.0 }
  0xa3   :  { %v306_v35 = vpop.xlane.xlu0 %305  ;;  %v2259_v53 = vpop.eup %2258  ;;  %v936_v16 = vmul.f32 1.442695, %v801_v43  ;;  %v675_v40 = vadd.f32 %v3239_v50, %v309_v49  ;;  %v3581_v9 = vsel %vm279_vm0, %v273_v33, 0.0  ;;  %v3589_v60 = vsel %vm279_vm0, %v258_v10, 0.0  ;;  %v124_v49 = vld [vmem:[%s4285_s1 + $0x360] sm:$0xff] }
  0xa4   :  { %v674_v7 = vadd.f32 %v3239_v50, %v306_v35  ;;  %v2261_v59 = vpop.eup %2260  ;;  %v1180_v28 = vadd.f32 1.0, %v2259_v53  ;;  %v934_v31 = vmul.f32 1.442695, %v800_v57  ;;  %v3592_v33 = vsel %vm279_vm0, %v244_v3, 0.0  ;;  %v3604_v10 = vld [vmem:[%s4286_s2] ss:$0 sm:$0xff] }
  0xa5   :  { %v1178_v61 = vadd.f32 1.0, %v2261_v59  ;;  %2270 = vpow2.f32 %v936_v16  ;;  %v803_v62 = vsub.f32 0.0, %v675_v40  ;;  %623 = vadd.xlane.f32.xlu1 %v3298_v14  ;;  %4294 = vst [vmem:[#allocation12_spill] sm:$0xff] %v3592_v33  ;;  %v3595_v57 = vsel %vm279_vm0, %v229_v44, 0.0  ;;  %v110_v44 = vld [vmem:[%s4285_s1 + $0x2f0] sm:$0xff]  ;;  %v95_v16 = vld [vmem:[%s4285_s1 + $0x278] sm:$0xff] }
  0xa6   :  { %v802_v35 = vsub.f32 0.0, %v674_v7  ;;  %578 = vadd.xlane.f32.xlu0 %v3301_v15  ;;  %2272 = vrcp.f32 %v1180_v28  ;;  %v315_v4 = vpop.xlane.xlu1 %314  ;;  %4295 = vst [vmem:[#allocation13_spill] sm:$0xff] %v3595_v57  ;;  %v274_v3 = vmul.f32 %v3604_v10, %v139_v1  ;;  %v259_v1 = vmul.f32 %v3604_v10, %v124_v49  ;;  %v125_v49 = vld [vmem:[%s4285_s1 + $0x368] sm:$0xff] }
  0xa7   :  { %v312_v43 = vpop.xlane.xlu0 %311  ;;  %v2263_v53 = vpop.eup %2262  ;;  %2274 = vrcp.f32 %v1178_v61  ;;  %v940_v14 = vmul.f32 1.442695, %v803_v62  ;;  %v677_v15 = vadd.f32 %v3239_v50, %v315_v4  ;;  %v140_v4 = vld [vmem:[%s4285_s1 + $0x3e0] sm:$0xff] }
  0xa8   :  { %v2265_v40 = vpop.eup %2264  ;;  %v1181_v7 = vadd.f32 1.0, %v2263_v53  ;;  %2276 = vpow2.f32 %v934_v31  ;;  %v938_v59 = vmul.f32 1.442695, %v802_v35  ;;  %v676_v28 = vadd.f32 %v3239_v50, %v312_v43 }
  0xa9   :  { %v1179_v61 = vadd.f32 1.0, %v2265_v40  ;;  %2278 = vpow2.f32 %v940_v14  ;;  %v805_v62 = vsub.f32 0.0, %v677_v15  ;;  %536 = vadd.xlane.f32.xlu1 %v3305_v17  ;;  %v245_v35 = vmul.f32 %v3604_v10, %v110_v44 }
  0xaa   :  { %491 = vadd.xlane.f32.xlu0 %v3308_v18  ;;  %2280 = vrcp.f32 %v1181_v7  ;;  %v804_v57 = vsub.f32 0.0, %v676_v28  ;;  %v321_v53 = vpop.xlane.xlu1 %320  ;;  %v230_v43 = vmul.f32 %v3604_v10, %v95_v16  ;;  %v275_v33 = vmul.f32 %v3604_v10, %v140_v4 }
  0xab   :  { %v318_v31 = vpop.xlane.xlu0 %317  ;;  %v2267_v14 = vpop.eup %2266  ;;  %2282 = vrcp.f32 %v1179_v61  ;;  %v944_v15 = vmul.f32 1.442695, %v805_v62  ;;  %v679_v17 = vadd.f32 %v3239_v50, %v321_v53 }
  0xac   :  { %v678_v18 = vadd.f32 %v3239_v50, %v318_v31  ;;  %v2269_v40 = vpop.eup %2268  ;;  %v1183_v7 = vadd.f32 1.0, %v2267_v14  ;;  %2284 = vpow2.f32 %v938_v59  ;;  %v942_v28 = vmul.f32 1.442695, %v804_v57 }
  0xad   :  { %v1182_v44 = vadd.f32 1.0, %v2269_v40  ;;  %2286 = vpow2.f32 %v944_v15  ;;  %v807_v16 = vsub.f32 0.0, %v679_v17  ;;  %626 = vadd.xlane.f32.xlu1 %v3323_v25  ;;  %v3631_v31 = vsel %vm279_vm0, %v274_v3, 0.0 }
  0xae   :  { %v806_v61 = vsub.f32 0.0, %v678_v18  ;;  %581 = vadd.xlane.f32.xlu0 %v3331_v29  ;;  %2288 = vrcp.f32 %v1183_v7  ;;  %v327_v62 = vpop.xlane.xlu1 %326  ;;  %v3634_v57 = vsel %vm279_vm0, %v259_v1, 0.0  ;;  %v260_v59 = vmul.f32 %v3604_v10, %v125_v49  ;;  %v126_v29 = vld [vmem:[%s4285_s1 + $0x370] sm:$0xff] }
  0xaf   :  { %v324_v53 = vpop.xlane.xlu0 %323  ;;  %v2271_v4 = vpop.eup %2270  ;;  %2290 = vrcp.f32 %v1182_v44  ;;  %v948_v14 = vmul.f32 1.442695, %v807_v16  ;;  %v681_v25 = vadd.f32 %v3239_v50, %v327_v62  ;;  %v3643_v1 = vsel %vm279_vm0, %v245_v35, 0.0 }
  0xb0   :  { %v946_v15 = vmul.f32 1.442695, %v806_v61  ;;  %v2273_v17 = vpop.eup %2272  ;;  %v1185_v18 = vadd.f32 1.0, %v2271_v4  ;;  %2292 = vpow2.f32 %v942_v28  ;;  %v680_v3 = vadd.f32 %v3239_v50, %v324_v53  ;;  %v111_v28 = vld [vmem:[%s4285_s1 + $0x2f8] sm:$0xff] }
  0xb1   :  { %v2275_v49 = vpop.eup %2274  ;;  %2294 = vpow2.f32 %v948_v14  ;;  %v809_v40 = vsub.f32 0.0, %v681_v25  ;;  %539 = vadd.xlane.f32.xlu1 %v3334_v30  ;;  %v3648_v7 = vsel %vm279_vm0, %v230_v43, 0.0  ;;  %v3651_v44 = vsel %vm279_vm0, %v275_v33, 0.0 }
  0xb2   :  { %494 = vadd.xlane.f32.xlu0 %v3337_v34  ;;  %4296 = vst [vmem:[#allocation14_spill] sm:$0xff] %v3648_v7  ;;  %4297 = vst [vmem:[#allocation15_spill] sm:$0xff] %v3651_v44  ;;  %v2277_v35 = vpop.eup %2276  ;;  %2296 = vrcp.f32 %v1185_v18  ;;  %v808_v16 = vsub.f32 0.0, %v680_v3  ;;  %v333_v61 = vpop.xlane.xlu1 %332  ;;  %v3657_v30 = vsel %vm279_vm0, %v260_v59, 0.0  ;;  %v3660_v34 = vmul.f32 %v3604_v10, %v126_v29 }
  0xb3   :  { %v330_v62 = vpop.xlane.xlu0 %329  ;;  %4298 = vst [vmem:[#allocation16_spill] sm:$0xff] %v3657_v30  ;;  %v2279_v43 = vpop.eup %2278  ;;  %v1184_v53 = vadd.f32 1.0, %v2277_v35  ;;  %2298 = vpow2.f32 %v946_v15  ;;  %v952_v33 = vmul.f32 1.442695, %v809_v40  ;;  %v683_v4 = vadd.f32 %v3239_v50, %v333_v61 }
  0xb4   :  { %v2281_v14 = vpop.eup %2280  ;;  %v1187_v25 = vadd.f32 1.0, %v2279_v43  ;;  %v950_v44 = vmul.f32 1.442695, %v808_v16  ;;  %v682_v18 = vadd.f32 %v3239_v50, %v330_v62  ;;  %v3665_v3 = vmul.f32 %v3604_v10, %v111_v28 }
  0xb5   :  { %v2283_v7 = vpop.eup %2282  ;;  %v1579_v59 = vrot.slane %v2273_v17, %v3272_v2  ;;  %v1567_v29 = vrot.slane %v2275_v49, %v3319_v23  ;;  %2300 = vrcp.f32 %v1184_v53  ;;  %v811_v30 = vsub.f32 0.0, %v683_v4  ;;  %629 = vadd.xlane.f32.xlu1 %v3359_v45 }
  0xb6   :  { %584 = vadd.xlane.f32.xlu0 %v3367_v52  ;;  %v2285_v15 = vpop.eup %2284  ;;  %v1586_v40 = vrot.slane %v2281_v14, %v3343_v38  ;;  %v1572_v35 = vrot.slane %v2283_v7, %v3355_v42  ;;  %2302 = vrcp.f32 %v1187_v25  ;;  %v810_v16 = vsub.f32 0.0, %v682_v18  ;;  %v339_v28 = vpop.xlane.xlu1 %338 }
  0xb7   :  { %v336_v61 = vpop.xlane.xlu0 %335  ;;  %v2287_v62 = vpop.eup %2286  ;;  %v1186_v17 = vadd.f32 1.0, %v2285_v15  ;;  %2304 = vpow2.f32 %v952_v33  ;;  %v956_v49 = vmul.f32 1.442695, %v811_v30  ;;  %v685_v43 = vadd.f32 %v3239_v50, %v339_v28 }
  0xb8   :  { %v2289_v53 = vpop.eup %2288  ;;  %v1574_v45 = vsel %vm1573_vm1, %v1572_v35, %v1567_v29  ;;  %v1189_v52 = vadd.f32 1.0, %v2287_v62  ;;  %2306 = vpow2.f32 %v950_v44  ;;  %v954_v4 = vmul.f32 1.442695, %v810_v16 }
  0xb9   :  { %v2291_v14 = vpop.eup %2290  ;;  %v1581_v7 = vsel %vm1580_vm2, %v1579_v59, %v1574_v45  ;;  %v1600_v25 = vrot.slane %v2289_v53, %v3376_v56  ;;  %2308 = vrcp.f32 %v1186_v17  ;;  %v813_v18 = vsub.f32 0.0, %v685_v43  ;;  %542 = vadd.xlane.f32.xlu1 %v3389_v36 }
  0xba   :  { %497 = vadd.xlane.f32.xlu0 %v3392_v0  ;;  %v2293_v30 = vpop.eup %2292  ;;  %v1588_v33 = vsel %vm1587_vm3, %v1586_v40, %v1581_v7  ;;  %v1593_v29 = vrot.slane %v2291_v14, %v3363_v47  ;;  %2310 = vrcp.f32 %v1189_v52  ;;  %v684_v44 = vadd.f32 %v3239_v50, %v336_v61  ;;  %v345_v15 = vpop.xlane.xlu1 %344 }
  0xbb   :  { %v342_v35 = vpop.xlane.xlu0 %341  ;;  %v2295_v16 = vpop.eup %2294  ;;  %v1188_v59 = vadd.f32 1.0, %v2293_v30  ;;  %2312 = vpow2.f32 %v956_v49  ;;  %v960_v28 = vmul.f32 1.442695, %v813_v18  ;;  %v687_v62 = vadd.f32 %v3239_v50, %v345_v15 }
  0xbc   :  { %v2297_v36 = vpop.eup %2296  ;;  %v1595_v0 = vsel %vm1594_vm4, %v1593_v29, %v1588_v33  ;;  %v1191_v17 = vadd.f32 1.0, %v2295_v16  ;;  %2314 = vpow2.f32 %v954_v4  ;;  %v812_v40 = vsub.f32 0.0, %v684_v44 }
  0xbd   :  { %v2299_v43 = vpop.eup %2298  ;;  %v1614_v53 = vrot.slane %v2297_v36, %v3395_v5  ;;  %v1602_v61 = vsel %vm1601_vm5, %v1600_v25, %v1595_v0  ;;  %2316 = vrcp.f32 %v1188_v59  ;;  %v815_v45 = vsub.f32 0.0, %v687_v62  ;;  %632 = vadd.xlane.f32.xlu1 %v3399_v8 }
  0xbe   :  { %587 = vadd.xlane.f32.xlu0 %v3413_v19  ;;  %2318 = vrcp.f32 %v1191_v17  ;;  %v1190_v49 = vadd.f32 1.0, %v2299_v43  ;;  %v958_v52 = vmul.f32 1.442695, %v812_v40  ;;  %v686_v14 = vadd.f32 %v3239_v50, %v342_v35  ;;  %v351_v7 = vpop.xlane.xlu1 %350  ;;  %v127_v40 = vld [vmem:[%s4285_s1 + $0x378] sm:$0xff] }
  0xbf   :  { %v348_v18 = vpop.xlane.xlu0 %347  ;;  %v2301_v4 = vpop.eup %2300  ;;  %2320 = vpow2.f32 %v960_v28  ;;  %v964_v30 = vmul.f32 1.442695, %v815_v45  ;;  %v689_v33 = vadd.f32 %v3239_v50, %v351_v7  ;;  %v3694_v44 = vsel %vm279_vm0, %v3660_v34, 0.0 }
  0xc0   :  { %v688_v25 = vadd.f32 %v3239_v50, %v348_v18  ;;  %v2303_v29 = vpop.eup %2302  ;;  %v1607_v8 = vrot.slane %v2301_v4, %v3385_v63  ;;  %2322 = vrcp.f32 %v1190_v49  ;;  %v814_v19 = vsub.f32 0.0, %v686_v14 }
  0xc1   :  { %v2305_v15 = vpop.eup %2304  ;;  %2324 = vpow2.f32 %v958_v52  ;;  %v817_v35 = vsub.f32 0.0, %v689_v33  ;;  %545 = vadd.xlane.f32.xlu1 %v3423_v26  ;;  %v3700_v59 = vsel %vm279_vm0, %v3665_v3, 0.0 }
  0xc2   :  { %v816_v16 = vsub.f32 0.0, %v688_v25  ;;  %500 = vadd.xlane.f32.xlu0 %v3426_v27  ;;  %v2307_v28 = vpop.eup %2306  ;;  %v1609_v62 = vsel %vm1608_vm6, %v1607_v8, %v1602_v61  ;;  %v1193_v36 = vadd.f32 1.0, %v2305_v15  ;;  %2326 = vpow2.f32 %v964_v30  ;;  %v357_v0 = vpop.xlane.xlu1 %356 }
  0xc3   :  { %v962_v34 = vmul.f32 1.442695, %v814_v19  ;;  %v354_v17 = vpop.xlane.xlu0 %353  ;;  %v2309_v26 = vpop.eup %2308  ;;  %v1628_v27 = vrot.slane %v2303_v29, %v3419_v21  ;;  %v1616_v43 = vsel %vm1615_vm7, %v1614_v53, %v1609_v62  ;;  %v1192_v3 = vadd.f32 1.0, %v2307_v28 }
  0xc4   :  { %v968_v45 = vmul.f32 1.442695, %v817_v35  ;;  %v2311_v49 = vpop.eup %2310  ;;  %v1621_v61 = vrot.slane %v2309_v26, %v3409_v12  ;;  %2328 = vrcp.f32 %v1193_v36  ;;  %v691_v52 = vadd.f32 %v3239_v50, %v357_v0 }
  0xc5   :  { %v690_v14 = vadd.f32 %v3239_v50, %v354_v17  ;;  %v2313_v7 = vpop.eup %2312  ;;  %v1642_v18 = vrot.slane %v2311_v49, %v3443_v46  ;;  %2330 = vrcp.f32 %v1192_v3  ;;  %v966_v4 = vmul.f32 1.442695, %v816_v16  ;;  %635 = vadd.xlane.f32.xlu1 %v3446_v48 }
  0xc6   :  { %590 = vadd.xlane.f32.xlu0 %v3456_v58  ;;  %v3715_v53 = vmul.f32 %v3604_v10, %v127_v40  ;;  %v2315_v30 = vpop.eup %2314  ;;  %v1623_v33 = vsel %vm1622_vm8, %v1621_v61, %v1616_v43  ;;  %v1195_v25 = vadd.f32 1.0, %v2313_v7  ;;  %2332 = vpow2.f32 %v962_v34  ;;  %v363_v8 = vpop.xlane.xlu1 %362 }
  0xc7   :  { %v819_v29 = vsub.f32 0.0, %v691_v52  ;;  %v360_v19 = vpop.xlane.xlu0 %359  ;;  %v2317_v15 = vpop.eup %2316  ;;  %v1630_v35 = vsel %vm1629_vm9, %v1628_v27, %v1623_v33  ;;  %v1194_v28 = vadd.f32 1.0, %v2315_v30  ;;  %2334 = vpow2.f32 %v968_v45 }
  0xc8   :  { %v818_v16 = vsub.f32 0.0, %v690_v14  ;;  %v2319_v48 = vpop.eup %2318  ;;  %v1635_v58 = vrot.slane %v2317_v15, %v3432_v37  ;;  %2336 = vrcp.f32 %v1195_v25  ;;  %v693_v36 = vadd.f32 %v3239_v50, %v363_v8 }
  0xc9   :  { %v972_v62 = vmul.f32 1.442695, %v819_v29  ;;  %v2321_v0 = vpop.eup %2320  ;;  %v1656_v34 = vrot.slane %v2319_v48, %v3462_v6  ;;  %2338 = vrcp.f32 %v1194_v28  ;;  %v692_v40 = vadd.f32 %v3239_v50, %v360_v19  ;;  %548 = vadd.xlane.f32.xlu1 %v3475_v51 }
  0xca   :  { %v970_v17 = vmul.f32 1.442695, %v818_v16  ;;  %503 = vadd.xlane.f32.xlu0 %v3478_v54  ;;  %v2323_v26 = vpop.eup %2322  ;;  %v1637_v27 = vsel %vm1636_vm10, %v1635_v58, %v1630_v35  ;;  %v1197_v43 = vadd.f32 1.0, %v2321_v0  ;;  %2340 = vpow2.f32 %v966_v4  ;;  %v369_v45 = vpop.xlane.xlu1 %368 }
  0xcb   :  { %v821_v3 = vsub.f32 0.0, %v693_v36  ;;  %v366_v49 = vpop.xlane.xlu0 %365  ;;  %v2325_v61 = vpop.eup %2324  ;;  %v1644_v52 = vsel %vm1643_vm11, %v1642_v18, %v1637_v27  ;;  %v1649_v14 = vrot.slane %v2323_v26, %v3452_v55  ;;  %2342 = vpow2.f32 %v972_v62 }
  0xcc   :  { %v820_v7 = vsub.f32 0.0, %v692_v40  ;;  %v2327_v30 = vpop.eup %2326  ;;  %2344 = vrcp.f32 %v1197_v43  ;;  %v1196_v51 = vadd.f32 1.0, %v2325_v61  ;;  %v695_v33 = vadd.f32 %v3239_v50, %v369_v45  ;;  %v4299_v43 = vld [vmem:[#allocation6_spill] sm:$0xff] }
  0xcd   :  { %v976_v54 = vmul.f32 1.442695, %v821_v3  ;;  %v1651_v25 = vsel %vm1650_vm12, %v1649_v14, %v1644_v52  ;;  %v1199_v4 = vadd.f32 1.0, %v2327_v30  ;;  %2346 = vpow2.f32 %v970_v17  ;;  %638 = vadd.xlane.f32.xlu1 %v3493_v39  ;;  %v141_v17 = vld [vmem:[%s4285_s1 + $0x3e8] sm:$0xff] }
  0xce   :  { %v974_v29 = vmul.f32 1.442695, %v820_v7  ;;  %593 = vadd.xlane.f32.xlu0 %v3500_v11  ;;  %v2329_v18 = vpop.eup %2328  ;;  %2348 = vrcp.f32 %v1196_v51  ;;  %v823_v8 = vsub.f32 0.0, %v695_v33  ;;  %v694_v19 = vadd.f32 %v3239_v50, %v366_v49  ;;  %v375_v15 = vpop.xlane.xlu1 %374 }
  0xcf   :  { %v372_v35 = vpop.xlane.xlu0 %371  ;;  %v1658_v28 = vsel %vm1657_vm13, %v1656_v34, %v1651_v25  ;;  %v2331_v16 = vpop.eup %2330  ;;  %v1670_v48 = vrot.slane %v2329_v18, %v3490_v32  ;;  %2350 = vrcp.f32 %v1199_v4  ;;  %v697_v58 = vadd.f32 %v3239_v50, %v375_v15 }
  0xd0   :  { %v696_v62 = vadd.f32 %v3239_v50, %v372_v35  ;;  %v2333_v39 = vpop.eup %2332  ;;  %v1663_v11 = vrot.slane %v2331_v16, %v3472_v20  ;;  %2352 = vpow2.f32 %v976_v54  ;;  %v980_v36 = vmul.f32 1.442695, %v823_v8 }
  0xd1   :  { %v822_v0 = vsub.f32 0.0, %v694_v19  ;;  %v2335_v40 = vpop.eup %2334  ;;  %v1198_v34 = vadd.f32 1.0, %v2333_v39  ;;  %2354 = vpow2.f32 %v974_v29  ;;  %v825_v26 = vsub.f32 0.0, %v697_v58  ;;  %551 = vadd.xlane.f32.xlu1 %v4299_v43  ;;  %v4300_v19 = vld [vmem:[#allocation7_spill] sm:$0xff] }
  0xd2   :  { %v824_v27 = vsub.f32 0.0, %v696_v62  ;;  %506 = vadd.xlane.f32.xlu0 %v3522_v24  ;;  %v2337_v3 = vpop.eup %2336  ;;  %v1201_v45 = vadd.f32 1.0, %v2335_v40  ;;  %2356 = vpow2.f32 %v980_v36  ;;  %v381_v61 = vpop.xlane.xlu1 %380  ;;  %v1665_v14 = vsel %vm1664_vm14, %v1663_v11, %v1658_v28 }
  0xd3   :  { %v978_v49 = vmul.f32 1.442695, %v822_v0  ;;  %v378_v52 = vpop.xlane.xlu0 %377  ;;  %v2339_v7 = vpop.eup %2338  ;;  %v1680_v30 = vrot.slane %v2337_v3, %v3355_v42  ;;  %2358 = vrcp.f32 %v1198_v34  ;;  %v984_v51 = vmul.f32 1.442695, %v825_v26 }
  0xd4   :  { %v3746_v54 = vmul.f32 %v3604_v10, %v141_v17  ;;  %v2341_v33 = vpop.eup %2340  ;;  %v1676_v25 = vrot.slane %v2339_v7, %v3319_v23  ;;  %2360 = vrcp.f32 %v1201_v45  ;;  %v699_v24 = vadd.f32 %v3239_v50, %v381_v61  ;;  %v4301_v45 = vld [vmem:[#allocation8_spill] sm:$0xff] }
  0xd5   :  { %v698_v4 = vadd.f32 %v3239_v50, %v378_v52  ;;  %v2343_v29 = vpop.eup %2342  ;;  %v1200_v18 = vadd.f32 1.0, %v2341_v33  ;;  %2362 = vpow2.f32 %v978_v49  ;;  %v982_v8 = vmul.f32 1.442695, %v824_v27  ;;  %641 = vadd.xlane.f32.xlu1 %v3525_v41  ;;  %v4302_v49 = vld [vmem:[#allocation9_spill] sm:$0xff] }
  0xd6   :  { %596 = vadd.xlane.f32.xlu0 %v4300_v19  ;;  %v3754_v15 = vsel %vm1671_vm15, %v1670_v48, %v1665_v14  ;;  %v2345_v35 = vpop.eup %2344  ;;  %v1681_v28 = vsel %vm1573_vm1, %v1680_v30, %v1676_v25  ;;  %v1203_v16 = vadd.f32 1.0, %v2343_v29  ;;  %2364 = vpow2.f32 %v984_v51  ;;  %v387_v62 = vpop.xlane.xlu1 %386  ;;  %v142_v29 = vld [vmem:[%s4285_s1 + $0x3f0] sm:$0xff] }
  0xd7   :  { %v827_v58 = vsub.f32 0.0, %v699_v24  ;;  %v384_v39 = vpop.xlane.xlu0 %383  ;;  %v2347_v11 = vpop.eup %2346  ;;  %v1690_v36 = vrot.slane %v2345_v35, %v3343_v38  ;;  %2366 = vrcp.f32 %v1200_v18  ;;  %v826_v0 = vsub.f32 0.0, %v698_v4 }
  0xd8   :  { %v701_v41 = vadd.f32 %v3239_v50, %v387_v62  ;;  %v2349_v17 = vpop.eup %2348  ;;  %2368 = vrcp.f32 %v1203_v16  ;;  %v1202_v40 = vadd.f32 1.0, %v2347_v11  ;;  %v700_v34 = vadd.f32 %v3239_v50, %v384_v39  ;;  %v4303_v62 = vld [vmem:[#allocation10_spill] sm:$0xff]  ;;  %v4304_v39 = vld [vmem:[#allocation11_spill] sm:$0xff] }
  0xd9   :  { %v988_v48 = vmul.f32 1.442695, %v827_v58  ;;  %v2351_v26 = vpop.eup %2350  ;;  %v1685_v27 = vrot.slane %v2349_v17, %v3272_v2  ;;  %2370 = vpow2.f32 %v982_v8  ;;  %v986_v43 = vmul.f32 1.442695, %v826_v0  ;;  %554 = vadd.xlane.f32.xlu1 %v4301_v45 }
  0xda   :  { %v829_v3 = vsub.f32 0.0, %v701_v41  ;;  %509 = vadd.xlane.f32.xlu0 %v4302_v49  ;;  %v2353_v61 = vpop.eup %2352  ;;  %v1700_v52 = vrot.slane %v2351_v26, %v3376_v56  ;;  %2372 = vrcp.f32 %v1202_v40  ;;  %v828_v14 = vsub.f32 0.0, %v700_v34  ;;  %v393_v7 = vpop.xlane.xlu1 %392 }
  0xdb   :  { %v390_v30 = vpop.xlane.xlu0 %389  ;;  %v3766_v51 = vsel %vm279_vm0, %v3715_v53, 0.0  ;;  %v2355_v33 = vpop.eup %2354  ;;  %v1686_v25 = vsel %vm1580_vm2, %v1685_v27, %v1681_v28  ;;  %v1205_v24 = vadd.f32 1.0, %v2353_v61  ;;  %2374 = vpow2.f32 %v988_v48 }
  0xdc   :  { %v992_v4 = vmul.f32 1.442695, %v829_v3  ;;  %v2357_v18 = vpop.eup %2356  ;;  %v1691_v8 = vsel %vm1587_vm3, %v1690_v36, %v1686_v25  ;;  %v1204_v19 = vadd.f32 1.0, %v2355_v33  ;;  %2376 = vpow2.f32 %v986_v43 }
  0xdd   :  { %v990_v35 = vmul.f32 1.442695, %v828_v14  ;;  %v2359_v16 = vpop.eup %2358  ;;  %2378 = vrcp.f32 %v1205_v24  ;;  %v1207_v53 = vadd.f32 1.0, %v2357_v18  ;;  %v703_v58 = vadd.f32 %v3239_v50, %v393_v7  ;;  %644 = vadd.xlane.f32.xlu1 %v4303_v62 }
  0xde   :  { %v702_v28 = vadd.f32 %v3239_v50, %v390_v30  ;;  %599 = vadd.xlane.f32.xlu0 %v4304_v39  ;;  %v2361_v11 = vpop.eup %2360  ;;  %v1695_v0 = vrot.slane %v2359_v16, %v3363_v47  ;;  %2380 = vrcp.f32 %v1204_v19  ;;  %v399_v41 = vpop.xlane.xlu1 %398  ;;  %v3780_v17 = vsel %vm279_vm0, %v3746_v54, 0.0 }
  0xdf   :  { %v396_v36 = vpop.xlane.xlu0 %395  ;;  %v3783_v40 = vmul.f32 %v3604_v10, %v142_v29  ;;  %v2363_v48 = vpop.eup %2362  ;;  %v1710_v34 = vrot.slane %v2361_v11, %v3395_v5  ;;  %2382 = vrcp.f32 %v1207_v53  ;;  %v831_v26 = vsub.f32 0.0, %v703_v58 }
  0xe0   :  { %v830_v27 = vsub.f32 0.0, %v702_v28  ;;  %v2365_v43 = vpop.eup %2364  ;;  %v1696_v3 = vsel %vm1594_vm4, %v1695_v0, %v1691_v8  ;;  %v1206_v45 = vadd.f32 1.0, %v2363_v48  ;;  %2384 = vpow2.f32 %v992_v4 }
  0xe1   :  { %v705_v49 = vadd.f32 %v3239_v50, %v399_v41  ;;  %v2367_v61 = vpop.eup %2366  ;;  %v1701_v54 = vsel %vm1601_vm5, %v1700_v52, %v1696_v3  ;;  %v1209_v14 = vadd.f32 1.0, %v2365_v43  ;;  %2386 = vpow2.f32 %v990_v35  ;;  %557 = vadd.xlane.f32.xlu1 %v3575_v13 }
  0xe2   :  { %v996_v7 = vmul.f32 1.442695, %v831_v26  ;;  %512 = vadd.xlane.f32.xlu0 %v3578_v22  ;;  %v2369_v30 = vpop.eup %2368  ;;  %v1705_v33 = vrot.slane %v2367_v61, %v3385_v63  ;;  %2388 = vrcp.f32 %v1206_v45  ;;  %v994_v25 = vmul.f32 1.442695, %v830_v27  ;;  %v405_v29 = vpop.xlane.xlu1 %404 }
  0xe3   :  { %v833_v24 = vsub.f32 0.0, %v705_v49  ;;  %v402_v4 = vpop.xlane.xlu0 %401  ;;  %v2371_v18 = vpop.eup %2370  ;;  %v1720_v8 = vrot.slane %v2369_v30, %v3419_v21  ;;  %2390 = vrcp.f32 %v1209_v14  ;;  %v704_v52 = vadd.f32 %v3239_v50, %v396_v36  ;;  %v4305_v30 = vld [vmem:[#allocation12_spill] sm:$0xff] }
  0xe4   :  { %v707_v19 = vadd.f32 %v3239_v50, %v405_v29  ;;  %v2373_v35 = vpop.eup %2372  ;;  %v1706_v13 = vsel %vm1608_vm6, %v1705_v33, %v1701_v54  ;;  %v1208_v22 = vadd.f32 1.0, %v2371_v18  ;;  %2392 = vpow2.f32 %v996_v7  ;;  %v4306_v33 = vld [vmem:[#allocation13_spill] sm:$0xff] }
  0xe5   :  { %v1000_v16 = vmul.f32 1.442695, %v833_v24  ;;  %v2375_v53 = vpop.eup %2374  ;;  %v1711_v58 = vsel %vm1615_vm7, %v1710_v34, %v1706_v13  ;;  %v1715_v28 = vrot.slane %v2373_v35, %v3409_v12  ;;  %2394 = vpow2.f32 %v994_v25  ;;  %647 = vadd.xlane.f32.xlu1 %v3581_v9  ;;  %v143_v9 = vld [vmem:[%s4285_s1 + $0x3f8] sm:$0xff]  ;;  %s2795_s1 = smov [#allocation3]  }
  0xe6   :  { %v832_v62 = vsub.f32 0.0, %v704_v52  ;;  %602 = vadd.xlane.f32.xlu0 %v3589_v60  ;;  %v2377_v39 = vpop.eup %2376  ;;  %2396 = vrcp.f32 %v1208_v22  ;;  %v1211_v11 = vadd.f32 1.0, %v2375_v53  ;;  %v835_v0 = vsub.f32 0.0, %v707_v19  ;;  %v411_v36 = vpop.xlane.xlu1 %410  ;;  %s2248_s26 = sshll.u32 %s2795_s1, 4  ;;  %s2249_s26 = int_to_ptr.vmem [resolvable:$true] %s2248_s26 }
  0xe7   :  { %v706_v41 = vadd.f32 %v3239_v50, %v402_v4  ;;  %v408_v48 = vpop.xlane.xlu0 %407  ;;  %v2379_v26 = vpop.eup %2378  ;;  %v1716_v27 = vsel %vm1622_vm8, %v1715_v28, %v1711_v58  ;;  %v1210_v34 = vadd.f32 1.0, %v2377_v39  ;;  %2398 = vpow2.f32 %v1000_v16  ;;  %s2771_s27 = scalar_lea.vmem %s2249_s26, 128  ;;  %p2776_p1 = scmp.lt.s32.totalorder %s2249_s26, %s2249_s26 }
  0xe8   :  { %v998_v43 = vmul.f32 1.442695, %v832_v62  ;;  %v2381_v3 = vpop.eup %2380  ;;  %v1730_v60 = vrot.slane %v2379_v26, %v3443_v46  ;;  %v1721_v45 = vsel %vm1629_vm9, %v1720_v8, %v1716_v27  ;;  %2400 = vrcp.f32 %v1211_v11  ;;  %p2772_p0 = scmp.ne.s32.totalorder %s2249_s26, %s2771_s27  ;;  %p2777_p2 = scmp.lt.s32.totalorder %s2771_s27, %s2771_s27 }
  0xe9   :  { %v1004_v49 = vmul.f32 1.442695, %v835_v0  ;;  %v3807_v61 = vpop.eup %2382  ;;  %v1725_v54 = vrot.slane %v2381_v3, %v3432_v37  ;;  %2402 = vrcp.f32 %v1210_v34  ;;  %v834_v14 = vsub.f32 0.0, %v706_v41  ;;  %560 = vadd.xlane.f32.xlu1 %v4305_v30 }
  0xea   :  { %v709_v7 = vadd.f32 %v3239_v50, %v411_v36  ;;  %515 = vadd.xlane.f32.xlu0 %v4306_v33  ;;  %v2385_v25 = vpop.eup %2384  ;;  %2404 = vpow2.f32 %v998_v43  ;;  %v708_v24 = vadd.f32 %v3239_v50, %v408_v48  ;;  %v417_v29 = vpop.xlane.xlu1 %416  ;;  %v3816_v18 = vsel %vm279_vm0, %v3783_v40, 0.0  ;;  %p2778_p3 = por %p2777_p2, %p2776_p1 }
  0xeb   :  { %v414_v4 = vpop.xlane.xlu0 %413  ;;  %v3819_v8 = vmul.f32 %v3604_v10, %v143_v9  ;;  %v2387_v52 = vpop.eup %2386  ;;  %v1726_v19 = vsel %vm1636_vm10, %v1725_v54, %v1721_v45  ;;  %v1213_v35 = vadd.f32 1.0, %v2385_v25  ;;  %2406 = vpow2.f32 %v1004_v49 }
  0xec   :  { %v1002_v13 = vmul.f32 1.442695, %v834_v14  ;;  %v2389_v22 = vpop.eup %2388  ;;  %v1731_v16 = vsel %vm1643_vm11, %v1730_v60, %v1726_v19  ;;  %v1212_v53 = vadd.f32 1.0, %v2387_v52  ;;  %v837_v58 = vsub.f32 0.0, %v709_v7  ;;  %v4307_v7 = vld [vmem:[#allocation14_spill] sm:$0xff]  ;;  %p2779_p4 = pnand %p2778_p3, %p2772_p0 }
  0xed   :  { %v836_v28 = vsub.f32 0.0, %v708_v24  ;;  %v3823_v62 = vpop.eup %2390  ;;  %v1735_v40 = vrot.slane %v2389_v22, %v3452_v55  ;;  %2408 = vrcp.f32 %v1213_v35  ;;  %v711_v10 = vadd.f32 %v3239_v50, %v417_v29  ;;  %650 = vadd.xlane.f32.xlu1 %v3631_v31 }
  0xee   :  { %v710_v39 = vadd.f32 %v3239_v50, %v414_v4  ;;  %605 = vadd.xlane.f32.xlu0 %v3634_v57  ;;  %v2393_v11 = vpop.eup %2392  ;;  %v1740_v0 = vrot.slane %v3807_v61, %v3462_v6  ;;  %2410 = vrcp.f32 %v1212_v53  ;;  %v1008_v41 = vmul.f32 1.442695, %v837_v58  ;;  %v423_v48 = vpop.xlane.xlu1 %422 }
  0xef   :  { %v1006_v36 = vmul.f32 1.442695, %v836_v28  ;;  %v420_v26 = vpop.xlane.xlu0 %419  ;;  %v2395_v27 = vpop.eup %2394  ;;  %v1736_v34 = vsel %vm1650_vm12, %v1735_v40, %v1731_v16  ;;  %v1215_v43 = vadd.f32 1.0, %v2393_v11  ;;  %2412 = vpow2.f32 %v1002_v13  ;;  %v4309_v11 = vld [vmem:[#allocation16_spill] sm:$0xff] }
  0xf0   :  { %v839_v9 = vsub.f32 0.0, %v711_v10  ;;  %v3833_v3 = vpop.eup %2396  ;;  %v1214_v31 = vadd.f32 1.0, %v2395_v27  ;;  %2414 = vpow2.f32 %v1008_v41  ;;  %v838_v57 = vsub.f32 0.0, %v710_v39  ;;  %v4308_v39 = vld [vmem:[#allocation15_spill] sm:$0xff] }
  0xf1   :  { %v713_v60 = vadd.f32 %v3239_v50, %v423_v48  ;;  %v2399_v45 = vpop.eup %2398  ;;  %v1745_v49 = vrot.slane %v3833_v3, %v3472_v20  ;;  %2416 = vrcp.f32 %v1215_v43  ;;  %v712_v14 = vadd.f32 %v3239_v50, %v420_v26  ;;  %563 = vadd.xlane.f32.xlu1 %v3643_v1 }
  0xf2   :  { %v1012_v54 = vmul.f32 1.442695, %v839_v9  ;;  %518 = vadd.xlane.f32.xlu0 %v4307_v7  ;;  %v2401_v30 = vpop.eup %2400  ;;  %2418 = vrcp.f32 %v1214_v31  ;;  %v1217_v33 = vadd.f32 1.0, %v2399_v45  ;;  %v1010_v25 = vmul.f32 1.442695, %v838_v57  ;;  %v429_v29 = vpop.xlane.xlu1 %428 }
  0xf3   :  { %v841_v24 = vsub.f32 0.0, %v713_v60  ;;  %v426_v4 = vpop.xlane.xlu0 %425  ;;  %v2403_v52 = vpop.eup %2402  ;;  %v1759_v19 = vrot.slane %v2401_v30, %v3355_v42  ;;  %2420 = vpow2.f32 %v1006_v36  ;;  %v840_v35 = vsub.f32 0.0, %v712_v14 }
  0xf4   :  { %v715_v13 = vadd.f32 %v3239_v50, %v429_v29  ;;  %v2405_v22 = vpop.eup %2404  ;;  %v1755_v16 = vrot.slane %v2403_v52, %v3319_v23  ;;  %2422 = vrcp.f32 %v1217_v33  ;;  %v714_v53 = vadd.f32 %v3239_v50, %v426_v4 }
  0xf5   :  { %v1016_v1 = vmul.f32 1.442695, %v841_v24  ;;  %v2407_v58 = vpop.eup %2406  ;;  %v1216_v28 = vadd.f32 1.0, %v2405_v22  ;;  %2424 = vpow2.f32 %v1012_v54  ;;  %v1014_v40 = vmul.f32 1.442695, %v840_v35  ;;  %653 = vadd.xlane.f32.xlu1 %v4308_v39 }
  0xf6   :  { %v843_v10 = vsub.f32 0.0, %v715_v13  ;;  %608 = vadd.xlane.f32.xlu0 %v4309_v11  ;;  %v1760_v41 = vsel %vm1573_vm1, %v1759_v19, %v1755_v16  ;;  %v1219_v36 = vadd.f32 1.0, %v2407_v58  ;;  %2426 = vpow2.f32 %v1010_v25  ;;  %v435_v26 = vpop.xlane.xlu1 %434 }
  0xf7   :  { %v842_v48 = vsub.f32 0.0, %v714_v53  ;;  %v432_v27 = vpop.xlane.xlu0 %431  ;;  %v2409_v43 = vpop.eup %2408  ;;  %2428 = vrcp.f32 %v1216_v28  ;;  %v717_v3 = vadd.f32 %v3239_v50, %v435_v26  ;;  %v1750_v60 = vrot.slane %v3823_v62, %v3490_v32 }
  0xf8   :  { %v1020_v9 = vmul.f32 1.442695, %v843_v10  ;;  %v716_v31 = vadd.f32 %v3239_v50, %v432_v27  ;;  %v2411_v57 = vpop.eup %2410  ;;  %v1769_v45 = vrot.slane %v2409_v43, %v3343_v38  ;;  %2430 = vrcp.f32 %v1219_v36 }
  0xf9   :  { %v1741_v54 = vsel %vm1657_vm13, %v1740_v0, %v1736_v34  ;;  %v2413_v14 = vpop.eup %2412  ;;  %v1764_v7 = vrot.slane %v2411_v57, %v3272_v2  ;;  %2432 = vpow2.f32 %v1016_v1  ;;  %v845_v30 = vsub.f32 0.0, %v717_v3  ;;  %611 = vadd.xlane.f32.xlu1 %v3694_v44 }
  0xfa   :  { %v844_v33 = vsub.f32 0.0, %v716_v31  ;;  %566 = vadd.xlane.f32.xlu0 %v3700_v59  ;;  %v2415_v25 = vpop.eup %2414  ;;  %v1218_v62 = vadd.f32 1.0, %v2413_v14  ;;  %2434 = vpow2.f32 %v1014_v40  ;;  %v1018_v24 = vmul.f32 1.442695, %v842_v48  ;;  %v441_v29 = vpop.xlane.xlu1 %440 }
  0xfb   :  { %v438_v4 = vpop.xlane.xlu0 %437  ;;  %v1746_v61 = vsel %vm1664_vm14, %v1745_v49, %v1741_v54  ;;  %v2417_v52 = vpop.eup %2416  ;;  %v1765_v0 = vsel %vm1580_vm2, %v1764_v7, %v1760_v41  ;;  %v1221_v34 = vadd.f32 1.0, %v2415_v25  ;;  %2436 = vpow2.f32 %v1020_v9 }
  0xfc   :  { %v1024_v19 = vmul.f32 1.442695, %v845_v30  ;;  %v2419_v35 = vpop.eup %2418  ;;  %v1779_v13 = vrot.slane %v2417_v52, %v3376_v56  ;;  %v1770_v44 = vsel %vm1587_vm3, %v1769_v45, %v1765_v0  ;;  %2438 = vrcp.f32 %v1218_v62 }
  0xfd   :  { %v1022_v59 = vmul.f32 1.442695, %v844_v33  ;;  %v2421_v22 = vpop.eup %2420  ;;  %v1774_v16 = vrot.slane %v2419_v35, %v3363_v47  ;;  %2440 = vrcp.f32 %v1221_v34  ;;  %v719_v1 = vadd.f32 %v3239_v50, %v441_v29  ;;  %614 = vadd.xlane.f32.xlu1 %v3766_v51 }
  0xfe   :  { %v718_v49 = vadd.f32 %v3239_v50, %v438_v4  ;;  %656 = vadd.xlane.f32.xlu0 %v3780_v17  ;;  %v2423_v53 = vpop.eup %2422  ;;  %v1220_v58 = vadd.f32 1.0, %v2421_v22  ;;  %2442 = vpow2.f32 %v1018_v24  ;;  %v447_v28 = vpop.xlane.xlu1 %446  ;;  %v661_v10 = vsel %vm279_vm0, %v3819_v8, 0.0 }
  0xff   :  { %v444_v40 = vpop.xlane.xlu0 %443  ;;  %v3872_v39 = vsel %vm1671_vm15, %v1750_v60, %v1746_v61  ;;  %v2425_v11 = vpop.eup %2424  ;;  %v1775_v41 = vsel %vm1594_vm4, %v1774_v16, %v1770_v44  ;;  %v1789_v36 = vrot.slane %v2423_v53, %v3395_v5  ;;  %2444 = vpow2.f32 %v1024_v19 }
 0x100   :  { %v847_v51 = vsub.f32 0.0, %v719_v1  ;;  %v2427_v48 = vpop.eup %2426  ;;  %v1780_v17 = vsel %vm1601_vm5, %v1779_v13, %v1775_v41  ;;  %2446 = vrcp.f32 %v1220_v58  ;;  %v1223_v26 = vadd.f32 1.0, %v2425_v11 }
 0x101   :  { %v846_v27 = vsub.f32 0.0, %v718_v49  ;;  %v2429_v43 = vpop.eup %2428  ;;  %v1222_v9 = vadd.f32 1.0, %v2427_v48  ;;  %2448 = vpow2.f32 %v1022_v59  ;;  %v721_v3 = vadd.f32 %v3239_v50, %v447_v28  ;;  %662 = vadd.xlane.f32.xlu1 %v661_v10 }
 0x102   :  { %v1028_v8 = vmul.f32 1.442695, %v847_v51  ;;  %659 = vadd.xlane.f32.xlu0 %v3816_v18  ;;  %v2431_v31 = vpop.eup %2430  ;;  %v1784_v57 = vrot.slane %v2429_v43, %v3385_v63  ;;  %2450 = vrcp.f32 %v1223_v26  ;;  %v720_v45 = vadd.f32 %v3239_v50, %v444_v40  ;;  %v453_v54 = vpop.xlane.xlu1 %452 }
 0x103   :  { %v1026_v60 = vmul.f32 1.442695, %v846_v27  ;;  %v450_v14 = vpop.xlane.xlu0 %449  ;;  %v2433_v7 = vpop.eup %2432  ;;  %v1799_v30 = vrot.slane %v2431_v31, %v3419_v21  ;;  %2452 = vrcp.f32 %v1222_v9  ;;  %v849_v33 = vsub.f32 0.0, %v721_v3 }
 0x104   :  { %v723_v25 = vadd.f32 %v3239_v50, %v453_v54  ;;  %v2435_v62 = vpop.eup %2434  ;;  %v1785_v18 = vsel %vm1608_vm6, %v1784_v57, %v1780_v17  ;;  %v1225_v24 = vadd.f32 1.0, %v2433_v7  ;;  %2454 = vpow2.f32 %v1028_v8 }
 0x105   :  { %v848_v29 = vsub.f32 0.0, %v720_v45  ;;  %v2437_v4 = vpop.eup %2436  ;;  %v1790_v61 = vsel %vm1615_vm7, %v1789_v36, %v1785_v18  ;;  %v1224_v52 = vadd.f32 1.0, %v2435_v62  ;;  %2456 = vpow2.f32 %v1026_v60 }
 0x106   :  { %v1032_v0 = vmul.f32 1.442695, %v849_v33  ;;  %v2439_v34 = vpop.eup %2438  ;;  %2458 = vrcp.f32 %v1225_v24  ;;  %v1227_v19 = vadd.f32 1.0, %v2437_v4  ;;  %v851_v13 = vsub.f32 0.0, %v723_v25  ;;  %v459_v44 = vpop.xlane.xlu1 %458 }
 0x107   :  { %v1030_v35 = vmul.f32 1.442695, %v848_v29  ;;  %v456_v59 = vpop.xlane.xlu0 %455  ;;  %v2441_v22 = vpop.eup %2440  ;;  %v1794_v16 = vrot.slane %v2439_v34, %v3409_v12  ;;  %2460 = vrcp.f32 %v1224_v52  ;;  %v722_v1 = vadd.f32 %v3239_v50, %v450_v14 }
 0x108   :  { %v725_v49 = vadd.f32 %v3239_v50, %v459_v44  ;;  %v2443_v53 = vpop.eup %2442  ;;  %v1809_v58 = vrot.slane %v2441_v22, %v3443_v46  ;;  %2462 = vrcp.f32 %v1227_v19  ;;  %v1036_v28 = vmul.f32 1.442695, %v851_v13 }
 0x109   :  { %v724_v40 = vadd.f32 %v3239_v50, %v456_v59  ;;  %v2445_v10 = vpop.eup %2444  ;;  %v1795_v11 = vsel %vm1622_vm8, %v1794_v16, %v1790_v61  ;;  %v1226_v41 = vadd.f32 1.0, %v2443_v53  ;;  %2464 = vpow2.f32 %v1032_v0 }
 0x10a   :  { %v850_v36 = vsub.f32 0.0, %v722_v1  ;;  %v2447_v51 = vpop.eup %2446  ;;  %v1800_v48 = vsel %vm1629_vm9, %v1799_v30, %v1795_v11  ;;  %v1229_v17 = vadd.f32 1.0, %v2445_v10  ;;  %2466 = vpow2.f32 %v1030_v35  ;;  %v465_v27 = vpop.xlane.xlu1 %464 }
 0x10b   :  { %v853_v26 = vsub.f32 0.0, %v725_v49  ;;  %v462_v43 = vpop.xlane.xlu0 %461  ;;  %v2449_v9 = vpop.eup %2448  ;;  %v1804_v8 = vrot.slane %v2447_v51, %v3432_v37  ;;  %2468 = vrcp.f32 %v1226_v41  ;;  %v852_v31 = vsub.f32 0.0, %v724_v40 }
 0x10c   :  { %v1034_v3 = vmul.f32 1.442695, %v850_v36  ;;  %v2451_v57 = vpop.eup %2450  ;;  %2470 = vrcp.f32 %v1229_v17  ;;  %v1228_v60 = vadd.f32 1.0, %v2449_v9  ;;  %v727_v54 = vadd.f32 %v3239_v50, %v465_v27 }
 0x10d   :  { %v1040_v45 = vmul.f32 1.442695, %v853_v26  ;;  %v2453_v14 = vpop.eup %2452  ;;  %v1805_v7 = vsel %vm1636_vm10, %v1804_v8, %v1800_v48  ;;  %v1819_v30 = vrot.slane %v2451_v57, %v3462_v6  ;;  %2472 = vpow2.f32 %v1036_v28 }
 0x10e   :  { %v1038_v33 = vmul.f32 1.442695, %v852_v31  ;;  %v2455_v25 = vpop.eup %2454  ;;  %v1810_v62 = vsel %vm1643_vm11, %v1809_v58, %v1805_v7  ;;  %v1814_v18 = vrot.slane %v2453_v14, %v3452_v55  ;;  %2474 = vrcp.f32 %v1228_v60  ;;  %v471_v29 = vpop.xlane.xlu1 %470 }
 0x10f   :  { %v855_v24 = vsub.f32 0.0, %v727_v54  ;;  %v468_v4 = vpop.xlane.xlu0 %467  ;;  %v2457_v61 = vpop.eup %2456  ;;  %v1231_v52 = vadd.f32 1.0, %v2455_v25  ;;  %2476 = vpow2.f32 %v1034_v3  ;;  %v726_v0 = vadd.f32 %v3239_v50, %v462_v43 }
 0x110   :  { %v729_v34 = vadd.f32 %v3239_v50, %v471_v29  ;;  %v3900_v19 = vpop.eup %2458  ;;  %v1815_v35 = vsel %vm1650_vm12, %v1814_v18, %v1810_v62  ;;  %v1230_v13 = vadd.f32 1.0, %v2457_v61  ;;  %2478 = vpow2.f32 %v1040_v45 }
 0x111   :  { %v1044_v44 = vmul.f32 1.442695, %v855_v24  ;;  %v2461_v59 = vpop.eup %2460  ;;  %v1829_v22 = vrot.slane %v3900_v19, %v3490_v32  ;;  %2480 = vrcp.f32 %v1231_v52  ;;  %v854_v16 = vsub.f32 0.0, %v726_v0 }
 0x112   :  { %v857_v1 = vsub.f32 0.0, %v729_v34  ;;  %v2463_v49 = vpop.eup %2462  ;;  %v1824_v53 = vrot.slane %v2461_v59, %v3472_v20  ;;  %2482 = vrcp.f32 %v1230_v13  ;;  %v728_v58 = vadd.f32 %v3239_v50, %v468_v4  ;;  %v477_v28 = vpop.xlane.xlu1 %476 }
 0x113   :  { %v474_v40 = vpop.xlane.xlu0 %473  ;;  %v1820_v10 = vsel %vm1657_vm13, %v1819_v30, %v1815_v35  ;;  %v2465_v11 = vpop.eup %2464  ;;  %v1838_v41 = vrot.slane %v2463_v49, %v3355_v42  ;;  %2484 = vpow2.f32 %v1038_v33  ;;  %v1042_v36 = vmul.f32 1.442695, %v854_v16 }
 0x114   :  { %v1048_v51 = vmul.f32 1.442695, %v857_v1  ;;  %vm2226_vm0 = vcmask 1041409   ;;  %v2467_v48 = vpop.eup %2466  ;;  %v1233_v17 = vadd.f32 1.0, %v2465_v11  ;;  %2486 = vpow2.f32 %v1044_v44 }
 0x115   :  { %v856_v26 = vsub.f32 0.0, %v728_v58  ;;  %v731_v27 = vadd.f32 %v3239_v50, %v477_v28  ;;  %v2469_v43 = vpop.eup %2468  ;;  %v1232_v9 = vadd.f32 1.0, %v2467_v48  ;;  %2488 = vpow2.f32 %v1042_v36 }
 0x116   :  { %v730_v8 = vadd.f32 %v3239_v50, %v474_v40  ;;  %v1825_v3 = vsel %vm1664_vm14, %v1824_v53, %v1820_v10  ;;  %v2471_v31 = vpop.eup %2470  ;;  %v1834_v57 = vrot.slane %v2469_v43, %v3319_v23  ;;  %2490 = vrcp.f32 %v1233_v17  ;;  %v522_v54 = vpop.xlane.xlu1 %521 }
 0x117   :  { %v1046_v60 = vmul.f32 1.442695, %v856_v26  ;;  %v859_v45 = vsub.f32 0.0, %v731_v27  ;;  %v480_v14 = vpop.xlane.xlu0 %479  ;;  %v2473_v7 = vpop.eup %2472  ;;  %v1848_v30 = vrot.slane %v2471_v31, %v3343_v38  ;;  %2492 = vrcp.f32 %v1232_v9 }
 0x118   :  { %v858_v33 = vsub.f32 0.0, %v730_v8  ;;  %v746_v25 = vadd.f32 %v3239_v50, %v522_v54  ;;  %v2475_v62 = vpop.eup %2474  ;;  %v1839_v18 = vsel %vm1573_vm1, %v1838_v41, %v1834_v57  ;;  %v1235_v24 = vadd.f32 1.0, %v2473_v7 }
 0x119   :  { %2494 = vpow2.f32 %v1048_v51  ;;  %v1052_v29 = vmul.f32 1.442695, %v859_v45  ;;  %v2477_v4 = vpop.eup %2476  ;;  %v1843_v61 = vrot.slane %v2475_v62, %v3272_v2  ;;  %v732_v35 = vadd.f32 %v3239_v50, %v480_v14 }
 0x11a   :  { %2496 = vpow2.f32 %v1046_v60  ;;  %v1050_v52 = vmul.f32 1.442695, %v858_v33  ;;  %v874_v0 = vsub.f32 0.0, %v746_v25  ;;  %v2479_v34 = vpop.eup %2478  ;;  %v1234_v19 = vadd.f32 1.0, %v2477_v4  ;;  %v483_v13 = vpop.xlane.xlu1 %482 }
 0x11b   :  { %2498 = vrcp.f32 %v1235_v24  ;;  %v525_v44 = vpop.xlane.xlu0 %524  ;;  %v3919_v59 = vsel %vm1671_vm15, %v1829_v22, %v1825_v3  ;;  %v2481_v16 = vpop.eup %2480  ;;  %v1844_v1 = vsel %vm1580_vm2, %v1843_v61, %v1839_v18  ;;  %v1237_v49 = vadd.f32 1.0, %v2479_v34 }
 0x11c   :  { %2500 = vpow2.f32 %v1052_v29  ;;  %v1082_v53 = vmul.f32 1.442695, %v874_v0  ;;  %v2483_v58 = vpop.eup %2482  ;;  %v1858_v28 = vrot.slane %v2481_v16, %v3376_v56  ;;  %v1849_v40 = vsel %vm1587_vm3, %v1848_v30, %v1844_v1 }
 0x11d   :  { %2502 = vrcp.f32 %v1234_v19  ;;  %v860_v10 = vsub.f32 0.0, %v732_v35  ;;  %v2485_v11 = vpop.eup %2484  ;;  %v1853_v41 = vrot.slane %v2483_v58, %v3363_v47  ;;  %v733_v22 = vadd.f32 %v3239_v50, %v483_v13 }
 0x11e   :  { %2504 = vrcp.f32 %v1237_v49  ;;  %v747_v36 = vadd.f32 %v3239_v50, %v525_v44  ;;  %v2487_v51 = vpop.eup %2486  ;;  %v1236_v48 = vadd.f32 1.0, %v2485_v11  ;;  %v570_v26 = vpop.xlane.xlu1 %569  ;;  %v3930_v43 = vsel %vm2226_vm0, %v3872_v39, %v3754_v15 }
 0x11f   :  { %2506 = vpow2.f32 %v1050_v52  ;;  %v1054_v17 = vmul.f32 1.442695, %v860_v10  ;;  %v528_v27 = vpop.xlane.xlu0 %527  ;;  %v2489_v9 = vpop.eup %2488  ;;  %v1854_v8 = vsel %vm1594_vm4, %v1853_v41, %v1849_v40  ;;  %v1239_v3 = vadd.f32 1.0, %v2487_v51 }
 0x120   :  { %2508 = vpow2.f32 %v1082_v53  ;;  %v861_v31 = vsub.f32 0.0, %v733_v22  ;;  %v2491_v57 = vpop.eup %2490  ;;  %v1859_v60 = vsel %vm1601_vm5, %v1858_v28, %v1854_v8  ;;  %v1238_v45 = vadd.f32 1.0, %v2489_v9 }
 0x121   :  { %2510 = vrcp.f32 %v1236_v48  ;;  %v875_v54 = vsub.f32 0.0, %v747_v36  ;;  %v2493_v14 = vpop.eup %2492  ;;  %v1868_v7 = vrot.slane %v2491_v57, %v3395_v5  ;;  %v762_v15 = vadd.f32 %v3239_v50, %v570_v26 }
 0x122   :  { %2512 = vrcp.f32 %v1239_v3  ;;  %v1056_v30 = vmul.f32 1.442695, %v861_v31  ;;  %v1863_v33 = vrot.slane %v2493_v14, %v3385_v63  ;;  %v748_v62 = vadd.f32 %v3239_v50, %v528_v27  ;;  %v486_v18 = vpop.xlane.xlu1 %485 }
 0x123   :  { %v2495_v39 = vpop.eup %2494  ;;  %2514 = vrcp.f32 %v1238_v45  ;;  %v1084_v25 = vmul.f32 1.442695, %v875_v54  ;;  %v573_v24 = vpop.xlane.xlu0 %572  ;;  %v890_v61 = vsub.f32 0.0, %v762_v15  ;;  %v734_v52 = vadd.f32 %v3239_v50, %v486_v18 }
 0x124   :  { %v2497_v29 = vpop.eup %2496  ;;  %v1241_v4 = vadd.f32 1.0, %v2495_v39  ;;  %2516 = vpow2.f32 %v1054_v17  ;;  %v1864_v34 = vsel %vm1608_vm6, %v1863_v33, %v1859_v60  ;;  %v876_v35 = vsub.f32 0.0, %v748_v62 }
 0x125   :  { %v2499_v0 = vpop.eup %2498  ;;  %v1240_v19 = vadd.f32 1.0, %v2497_v29  ;;  %2518 = vpow2.f32 %v1056_v30  ;;  %v1869_v16 = vsel %vm1615_vm7, %v1868_v7, %v1864_v34  ;;  %v1114_v1 = vmul.f32 1.442695, %v890_v61 }
 0x126   :  { %v2501_v13 = vpop.eup %2500  ;;  %v1878_v44 = vrot.slane %v2499_v0, %v3419_v21  ;;  %2520 = vrcp.f32 %v1241_v4  ;;  %v1086_v58 = vmul.f32 1.442695, %v876_v35  ;;  %v862_v28 = vsub.f32 0.0, %v734_v52  ;;  %v576_v40 = vpop.xlane.xlu1 %575 }
 0x127   :  { %v2503_v49 = vpop.eup %2502  ;;  %2522 = vrcp.f32 %v1240_v19  ;;  %v1243_v53 = vadd.f32 1.0, %v2501_v13  ;;  %v531_v10 = vpop.xlane.xlu0 %530  ;;  %v763_v22 = vadd.f32 %v3239_v50, %v573_v24  ;;  %v764_v36 = vadd.f32 %v3239_v50, %v576_v40 }
 0x128   :  { %v3942_v11 = vpop.eup %2504  ;;  %v1873_v41 = vrot.slane %v2503_v49, %v3409_v12  ;;  %2524 = vpow2.f32 %v1084_v25  ;;  %v1058_v48 = vmul.f32 1.442695, %v862_v28  ;;  %v749_v17 = vadd.f32 %v3239_v50, %v531_v10 }
 0x129   :  { %v2507_v51 = vpop.eup %2506  ;;  %2526 = vrcp.f32 %v1243_v53  ;;  %v891_v8 = vsub.f32 0.0, %v763_v22  ;;  %v892_v60 = vsub.f32 0.0, %v764_v36  ;;  %vm2228_vm0 = vcmask 1042434  }
 0x12a   :  { %v2509_v26 = vpop.eup %2508  ;;  %v1874_v27 = vsel %vm1622_vm8, %v1873_v41, %v1869_v16  ;;  %v1242_v9 = vadd.f32 1.0, %v2507_v51  ;;  %2528 = vpow2.f32 %v1114_v1  ;;  %v621_v45 = vpop.xlane.xlu1 %620  ;;  %v877_v15 = vsub.f32 0.0, %v749_v17 }
 0x12b   :  { %v2511_v3 = vpop.eup %2510  ;;  %v1879_v31 = vsel %vm1629_vm9, %v1878_v44, %v1874_v27  ;;  %v1258_v57 = vadd.f32 1.0, %v2509_v26  ;;  %2530 = vpow2.f32 %v1086_v58  ;;  %v618_v54 = vpop.xlane.xlu0 %617  ;;  %v1116_v30 = vmul.f32 1.442695, %v891_v8 }
 0x12c   :  { %v3950_v14 = vpop.eup %2512  ;;  %v1883_v7 = vrot.slane %v2511_v3, %v3432_v37  ;;  %2532 = vrcp.f32 %v1242_v9  ;;  %v1888_v33 = vrot.slane %v3942_v11, %v3443_v46  ;;  %v1118_v25 = vmul.f32 1.442695, %v892_v60 }
 0x12d   :  { %v2515_v39 = vpop.eup %2514  ;;  %2534 = vrcp.f32 %v1258_v57  ;;  %v779_v62 = vadd.f32 %v3239_v50, %v621_v45  ;;  %v1898_v29 = vrot.slane %v3950_v14, %v3462_v6  ;;  %v1088_v4 = vmul.f32 1.442695, %v877_v15 }
 0x12e   :  { %v2517_v18 = vpop.eup %2516  ;;  %v1884_v24 = vsel %vm1636_vm10, %v1883_v7, %v1879_v31  ;;  %2536 = vpow2.f32 %v1058_v48  ;;  %v778_v34 = vadd.f32 %v3239_v50, %v618_v54  ;;  %v534_v19 = vpop.xlane.xlu1 %533  ;;  %v1893_v53 = vrot.slane %v2515_v39, %v3452_v55 }
 0x12f   :  { %v2519_v61 = vpop.eup %2518  ;;  %v1244_v52 = vadd.f32 1.0, %v2517_v18  ;;  %2538 = vpow2.f32 %v1116_v30  ;;  %v907_v0 = vsub.f32 0.0, %v779_v62  ;;  %v489_v35 = vpop.xlane.xlu0 %488  ;;  %v750_v16 = vadd.f32 %v3239_v50, %v534_v19 }
 0x130   :  { %v3960_v13 = vpop.eup %2520  ;;  %v1245_v44 = vadd.f32 1.0, %v2519_v61  ;;  %2540 = vpow2.f32 %v1118_v25  ;;  %v735_v1 = vadd.f32 %v3239_v50, %v489_v35  ;;  %v906_v28 = vsub.f32 0.0, %v778_v34 }
 0x131   :  { %v3964_v49 = vpop.eup %2522  ;;  %2542 = vrcp.f32 %v1244_v52  ;;  %v1148_v58 = vmul.f32 1.442695, %v907_v0  ;;  %v1908_v10 = vrot.slane %v3960_v13, %v3490_v32  ;;  %v878_v11 = vsub.f32 0.0, %v750_v16 }
 0x132   :  { %v2525_v40 = vpop.eup %2524  ;;  %2544 = vrcp.f32 %v1245_v44  ;;  %v863_v41 = vsub.f32 0.0, %v735_v1  ;;  %v1146_v51 = vmul.f32 1.442695, %v906_v28  ;;  %v624_v48 = vpop.xlane.xlu1 %623  ;;  %v1889_v26 = vsel %vm1643_vm11, %v1888_v33, %v1884_v24 }
 0x133   :  { %v2527_v22 = vpop.eup %2526  ;;  %v1259_v36 = vadd.f32 1.0, %v2525_v40  ;;  %2546 = vpow2.f32 %v1088_v4  ;;  %v579_v17 = vpop.xlane.xlu0 %578  ;;  %v1090_v8 = vmul.f32 1.442695, %v878_v11  ;;  %v780_v60 = vadd.f32 %v3239_v50, %v624_v48 }
 0x134   :  { %v2529_v27 = vpop.eup %2528  ;;  %v1917_v9 = vrot.slane %v2527_v22, %v3355_v42  ;;  %2548 = vpow2.f32 %v1148_v58  ;;  %v1060_v3 = vmul.f32 1.442695, %v863_v41  ;;  %v765_v45 = vadd.f32 %v3239_v50, %v579_v17 }
 0x135   :  { %v2531_v31 = vpop.eup %2530  ;;  %2550 = vrcp.f32 %v1259_v36  ;;  %v1274_v57 = vadd.f32 1.0, %v2529_v27  ;;  %v1894_v30 = vsel %vm1650_vm12, %v1893_v53, %v1889_v26  ;;  %v3977_v15 = vsel %vm2228_vm0, %v3919_v59, %v3930_v43 }
 0x136   :  { %v2533_v54 = vpop.eup %2532  ;;  %v1260_v7 = vadd.f32 1.0, %v2531_v31  ;;  %2552 = vpow2.f32 %v1146_v51  ;;  %v908_v25 = vsub.f32 0.0, %v780_v60  ;;  %v893_v62 = vsub.f32 0.0, %v765_v45  ;;  %v537_v18 = vpop.xlane.xlu1 %536 }
 0x137   :  { %v3979_v39 = vpop.eup %2534  ;;  %v1913_v33 = vrot.slane %v2533_v54, %v3319_v23  ;;  %2554 = vrcp.f32 %v1274_v57  ;;  %v492_v24 = vpop.xlane.xlu0 %491  ;;  %v1903_v61 = vrot.slane %v3964_v49, %v3472_v20  ;;  %v751_v52 = vadd.f32 %v3239_v50, %v537_v18 }
 0x138   :  { %v2537_v4 = vpop.eup %2536  ;;  %2556 = vrcp.f32 %v1260_v7  ;;  %v736_v0 = vadd.f32 %v3239_v50, %v492_v24  ;;  %v1992_v34 = vrot.slane %v3979_v39, %v3319_v23  ;;  %v1150_v16 = vmul.f32 1.442695, %v908_v25 }
 0x139   :  { %v2539_v59 = vpop.eup %2538  ;;  %v1918_v43 = vsel %vm1573_vm1, %v1917_v9, %v1913_v33  ;;  %v1246_v19 = vadd.f32 1.0, %v2537_v4  ;;  %2558 = vpow2.f32 %v1090_v8  ;;  %v879_v1 = vsub.f32 0.0, %v751_v52 }
 0x13a   :  { %v2541_v35 = vpop.eup %2540  ;;  %v1275_v44 = vadd.f32 1.0, %v2539_v59  ;;  %2560 = vpow2.f32 %v1060_v3  ;;  %v1120_v28 = vmul.f32 1.442695, %v893_v62  ;;  %v627_v40 = vpop.xlane.xlu1 %626  ;;  %v1899_v41 = vsel %vm1657_vm13, %v1898_v29, %v1894_v30 }
 0x13b   :  { %v2543_v53 = vpop.eup %2542  ;;  %2562 = vrcp.f32 %v1246_v19  ;;  %v1276_v58 = vadd.f32 1.0, %v2541_v35  ;;  %v582_v11 = vpop.xlane.xlu0 %581  ;;  %v864_v51 = vsub.f32 0.0, %v736_v0  ;;  %v781_v48 = vadd.f32 %v3239_v50, %v627_v40 }
 0x13c   :  { %v2545_v22 = vpop.eup %2544  ;;  %v1922_v36 = vrot.slane %v2543_v53, %v3272_v2  ;;  %2564 = vrcp.f32 %v1275_v44  ;;  %v1092_v27 = vmul.f32 1.442695, %v879_v1  ;;  %v766_v9 = vadd.f32 %v3239_v50, %v582_v11 }
 0x13d   :  { %v2547_v17 = vpop.eup %2546  ;;  %v1927_v26 = vrot.slane %v2545_v22, %v3343_v38  ;;  %2566 = vrcp.f32 %v1276_v58  ;;  %v909_v29 = vsub.f32 0.0, %v781_v48  ;;  %v1062_v33 = vmul.f32 1.442695, %v864_v51 }
 0x13e   :  { %v2549_v8 = vpop.eup %2548  ;;  %v1923_v3 = vsel %vm1580_vm2, %v1922_v36, %v1918_v43  ;;  %v1261_v14 = vadd.f32 1.0, %v2547_v17  ;;  %2568 = vpow2.f32 %v1150_v16  ;;  %v894_v45 = vsub.f32 0.0, %v766_v9  ;;  %v540_v54 = vpop.xlane.xlu1 %539 }
 0x13f   :  { %v2551_v31 = vpop.eup %2550  ;;  %v1928_v57 = vsel %vm1587_vm3, %v1927_v26, %v1923_v3  ;;  %v1291_v60 = vadd.f32 1.0, %v2549_v8  ;;  %2570 = vpow2.f32 %v1120_v28  ;;  %v495_v7 = vpop.xlane.xlu0 %494  ;;  %v752_v25 = vadd.f32 %v3239_v50, %v540_v54 }
 0x140   :  { %v2553_v30 = vpop.eup %2552  ;;  %v1996_v39 = vrot.slane %v2551_v31, %v3355_v42  ;;  %2572 = vrcp.f32 %v1261_v14  ;;  %v1152_v24 = vmul.f32 1.442695, %v909_v29  ;;  %v737_v4 = vadd.f32 %v3239_v50, %v495_v7 }
 0x141   :  { %v2555_v62 = vpop.eup %2554  ;;  %2574 = vrcp.f32 %v1291_v60  ;;  %v1290_v18 = vadd.f32 1.0, %v2553_v30  ;;  %v1122_v59 = vmul.f32 1.442695, %v894_v45  ;;  %v880_v43 = vsub.f32 0.0, %v752_v25 }
 0x142   :  { %v2557_v52 = vpop.eup %2556  ;;  %v1997_v0 = vsel %vm1573_vm1, %v1996_v39, %v1992_v34  ;;  %2576 = vpow2.f32 %v1092_v27  ;;  %v865_v44 = vsub.f32 0.0, %v737_v4  ;;  %v630_v16 = vpop.xlane.xlu1 %629  ;;  %v1904_v53 = vsel %vm1664_vm14, %v1903_v61, %v1899_v41 }
 0x143   :  { %v2559_v19 = vpop.eup %2558  ;;  %v2001_v35 = vrot.slane %v2557_v52, %v3272_v2  ;;  %2578 = vrcp.f32 %v1290_v18  ;;  %v585_v1 = vpop.xlane.xlu0 %584  ;;  %v1094_v40 = vmul.f32 1.442695, %v880_v43  ;;  %v782_v34 = vadd.f32 %v3239_v50, %v630_v16 }
 0x144   :  { %v2561_v58 = vpop.eup %2560  ;;  %v1262_v28 = vadd.f32 1.0, %v2559_v19  ;;  %2580 = vpow2.f32 %v1062_v33  ;;  %v1064_v51 = vmul.f32 1.442695, %v865_v44  ;;  %v767_v49 = vadd.f32 %v3239_v50, %v585_v1 }
 0x145   :  { %v2563_v11 = vpop.eup %2562  ;;  %v2002_v22 = vsel %vm1580_vm2, %v2001_v35, %v1997_v0  ;;  %v1247_v36 = vadd.f32 1.0, %v2561_v58  ;;  %2582 = vpow2.f32 %v1152_v24  ;;  %v910_v26 = vsub.f32 0.0, %v782_v34 }
 0x146   :  { %v2565_v48 = vpop.eup %2564  ;;  %v1932_v17 = vrot.slane %v2563_v11, %v3363_v47  ;;  %2584 = vrcp.f32 %v1262_v28  ;;  %v2071_v41 = vrot.slane %v2555_v62, %v3319_v23  ;;  %v543_v9 = vpop.xlane.xlu1 %542  ;;  %v1909_v3 = vsel %vm1671_vm15, %v1908_v10, %v1904_v53 }
 0x147   :  { %v2567_v61 = vpop.eup %2566  ;;  %v2075_v27 = vrot.slane %v2565_v48, %v3355_v42  ;;  %2586 = vrcp.f32 %v1247_v36  ;;  %v498_v8 = vpop.xlane.xlu0 %497  ;;  %vm2230_vm0 = vcmask 1043459   ;;  %v1154_v60 = vmul.f32 1.442695, %v910_v26 }
 0x148   :  { %v2569_v14 = vpop.eup %2568  ;;  %v4019_v29 = vsel %vm1594_vm4, %v1932_v17, %v1928_v57  ;;  %v2080_v31 = vrot.slane %v2567_v61, %v3272_v2  ;;  %2588 = vpow2.f32 %v1122_v59  ;;  %v895_v30 = vsub.f32 0.0, %v767_v49 }
 0x149   :  { %v2571_v45 = vpop.eup %2570  ;;  %v2076_v54 = vsel %vm1573_vm1, %v2075_v27, %v2071_v41  ;;  %v1292_v7 = vadd.f32 1.0, %v2569_v14  ;;  %2590 = vpow2.f32 %v1094_v40  ;;  %v753_v33 = vadd.f32 %v3239_v50, %v543_v9 }
 0x14a   :  { %v2573_v39 = vpop.eup %2572  ;;  %v4024_v13 = vsel %vm1580_vm2, %v2080_v31, %v2076_v54  ;;  %v1277_v10 = vadd.f32 1.0, %v2571_v45  ;;  %2592 = vpow2.f32 %v1064_v51  ;;  %v1124_v62 = vmul.f32 1.442695, %v895_v30  ;;  %v633_v24 = vpop.xlane.xlu1 %632 }
 0x14b   :  { %v2575_v57 = vpop.eup %2574  ;;  %v2006_v25 = vrot.slane %v2573_v39, %v3343_v38  ;;  %2594 = vrcp.f32 %v1292_v7  ;;  %v738_v18 = vadd.f32 %v3239_v50, %v498_v8  ;;  %v588_v4 = vpop.xlane.xlu0 %587  ;;  %v881_v59 = vsub.f32 0.0, %v753_v33 }
 0x14c   :  { %v2577_v52 = vpop.eup %2576  ;;  %v2154_v0 = vrot.slane %v2575_v57, %v3355_v42  ;;  %2596 = vrcp.f32 %v1277_v10  ;;  %v783_v43 = vadd.f32 %v3239_v50, %v633_v24  ;;  %v768_v11 = vadd.f32 %v3239_v50, %v588_v4 }
 0x14d   :  { %v2579_v19 = vpop.eup %2578  ;;  %v2007_v35 = vsel %vm1587_vm3, %v2006_v25, %v2002_v22  ;;  %v1263_v44 = vadd.f32 1.0, %v2577_v52  ;;  %2598 = vpow2.f32 %v1154_v60  ;;  %v866_v16 = vsub.f32 0.0, %v738_v18 }
 0x14e   :  { %v2581_v1 = vpop.eup %2580  ;;  %v2150_v53 = vrot.slane %v2579_v19, %v3319_v23  ;;  %2600 = vpow2.f32 %v1124_v62  ;;  %v1096_v58 = vmul.f32 1.442695, %v881_v59  ;;  %v911_v28 = vsub.f32 0.0, %v783_v43  ;;  %v546_v36 = vpop.xlane.xlu1 %545 }
 0x14f   :  { %v2583_v40 = vpop.eup %2582  ;;  %2602 = vrcp.f32 %v1263_v44  ;;  %v1248_v34 = vadd.f32 1.0, %v2581_v1  ;;  %v1066_v42 = vmul.f32 1.442695, %v866_v16  ;;  %v501_v51 = vpop.xlane.xlu0 %500  ;;  %v896_v61 = vsub.f32 0.0, %v768_v11 }
 0x150   :  { %v2585_v48 = vpop.eup %2584  ;;  %v2155_v22 = vsel %vm1573_vm1, %v2154_v0, %v2150_v53  ;;  %v1293_v17 = vadd.f32 1.0, %v2583_v40  ;;  %2604 = vpow2.f32 %v1096_v58  ;;  %v1156_v26 = vmul.f32 1.442695, %v911_v28 }
 0x151   :  { %v2587_v49 = vpop.eup %2586  ;;  %v2011_v23 = vrot.slane %v2585_v48, %v3363_v47  ;;  %2606 = vrcp.f32 %v1248_v34  ;;  %v754_v41 = vadd.f32 %v3239_v50, %v546_v36  ;;  %v739_v8 = vadd.f32 %v3239_v50, %v501_v51 }
 0x152   :  { %v2589_v27 = vpop.eup %2588  ;;  %v1937_v9 = vrot.slane %v2587_v49, %v3376_v56  ;;  %2608 = vrcp.f32 %v1293_v17  ;;  %v4041_v14 = vsel %vm2230_vm0, %v1909_v3, %v3977_v15  ;;  %v1126_v54 = vmul.f32 1.442695, %v896_v61  ;;  %v636_v7 = vpop.xlane.xlu1 %635 }
 0x153   :  { %v2591_v31 = vpop.eup %2590  ;;  %v2012_v60 = vsel %vm1594_vm4, %v2011_v23, %v2007_v35  ;;  %v1278_v45 = vadd.f32 1.0, %v2589_v27  ;;  %2610 = vpow2.f32 %v1066_v42  ;;  %v591_v30 = vpop.xlane.xlu0 %590  ;;  %v882_v57 = vsub.f32 0.0, %v754_v41 }
 0x154   :  { %v2593_v39 = vpop.eup %2592  ;;  %v1938_v10 = vsel %vm1601_vm5, %v1937_v9, %v4019_v29  ;;  %v1264_v33 = vadd.f32 1.0, %v2591_v31  ;;  %2612 = vpow2.f32 %v1156_v26  ;;  %v867_v15 = vsub.f32 0.0, %v739_v8 }
 0x155   :  { %v2595_v25 = vpop.eup %2594  ;;  %2614 = vrcp.f32 %v1278_v45  ;;  %v1249_v62 = vadd.f32 1.0, %v2593_v39  ;;  %v784_v3 = vadd.f32 %v3239_v50, %v636_v7  ;;  %v1098_v4 = vmul.f32 1.442695, %v882_v57 }
 0x156   :  { %v2597_v18 = vpop.eup %2596  ;;  %v2159_v24 = vrot.slane %v2595_v25, %v3272_v2  ;;  %2616 = vrcp.f32 %v1264_v33  ;;  %v769_v52 = vadd.f32 %v3239_v50, %v591_v30  ;;  %v1068_v29 = vmul.f32 1.442695, %v867_v15  ;;  %v549_v19 = vpop.xlane.xlu1 %548 }
 0x157   :  { %v2599_v0 = vpop.eup %2598  ;;  %v2085_v59 = vrot.slane %v2597_v18, %v3343_v38  ;;  %2618 = vrcp.f32 %v1249_v62  ;;  %v912_v43 = vsub.f32 0.0, %v784_v3  ;;  %v504_v35 = vpop.xlane.xlu0 %503  ;;  %v755_v11 = vadd.f32 %v3239_v50, %v549_v19 }
 0x158   :  { %v2601_v44 = vpop.eup %2600  ;;  %v2160_v16 = vsel %vm1580_vm2, %v2159_v24, %v2155_v22  ;;  %v1294_v1 = vadd.f32 1.0, %v2599_v0  ;;  %2620 = vpow2.f32 %v1126_v54  ;;  %v897_v53 = vsub.f32 0.0, %v769_v52 }
 0x159   :  { %v2603_v58 = vpop.eup %2602  ;;  %v2086_v2 = vsel %vm1587_vm3, %v2085_v59, %v4024_v13  ;;  %v1279_v28 = vadd.f32 1.0, %v2601_v44  ;;  %2622 = vpow2.f32 %v1098_v4  ;;  %v1158_v42 = vmul.f32 1.442695, %v912_v43 }
 0x15a   :  { %v2605_v40 = vpop.eup %2604  ;;  %v2016_v34 = vrot.slane %v2603_v58, %v3376_v56  ;;  %2624 = vrcp.f32 %v1294_v1  ;;  %v1128_v48 = vmul.f32 1.442695, %v897_v53  ;;  %v740_v22 = vadd.f32 %v3239_v50, %v504_v35  ;;  %v639_v17 = vpop.xlane.xlu1 %638 }
 0x15b   :  { %v2607_v36 = vpop.eup %2606  ;;  %2626 = vrcp.f32 %v1279_v28  ;;  %v1265_v51 = vadd.f32 1.0, %v2605_v40  ;;  %v594_v26 = vpop.xlane.xlu0 %593  ;;  %v883_v61 = vsub.f32 0.0, %v755_v11  ;;  %v785_v8 = vadd.f32 %v3239_v50, %v639_v17 }
 0x15c   :  { %v2609_v49 = vpop.eup %2608  ;;  %v2017_v13 = vsel %vm1601_vm5, %v2016_v34, %v2012_v60  ;;  %v1942_v23 = vrot.slane %v2607_v36, %v3385_v63  ;;  %2628 = vpow2.f32 %v1068_v29  ;;  %v868_v9 = vsub.f32 0.0, %v740_v22 }
 0x15d   :  { %v2611_v41 = vpop.eup %2610  ;;  %v2164_v27 = vrot.slane %v2609_v49, %v3343_v38  ;;  %2630 = vpow2.f32 %v1158_v42  ;;  %v1100_v54 = vmul.f32 1.442695, %v883_v61  ;;  %v913_v38 = vsub.f32 0.0, %v785_v8 }
 0x15e   :  { %v2613_v31 = vpop.eup %2612  ;;  %v1943_v45 = vsel %vm1608_vm6, %v1942_v23, %v1938_v10  ;;  %2632 = vpow2.f32 %v1128_v48  ;;  %v1070_v60 = vmul.f32 1.442695, %v868_v9  ;;  %v552_v39 = vpop.xlane.xlu1 %551  ;;  %v770_v62 = vadd.f32 %v3239_v50, %v594_v26 }
 0x15f   :  { %v2615_v7 = vpop.eup %2614  ;;  %v2165_v30 = vsel %vm1587_vm3, %v2164_v27, %v2160_v16  ;;  %v507_v33 = vpop.xlane.xlu0 %506  ;;  %2634 = vrcp.f32 %v1265_v51  ;;  %v1250_v10 = vadd.f32 1.0, %v2611_v41  ;;  %v756_v18 = vadd.f32 %v3239_v50, %v552_v39 }
 0x160   :  { %v2617_v57 = vpop.eup %2616  ;;  %v2090_v25 = vrot.slane %v2615_v7, %v3363_v47  ;;  %v741_v24 = vadd.f32 %v3239_v50, %v507_v33  ;;  %2636 = vpow2.f32 %v1100_v54  ;;  %v1160_v59 = vmul.f32 1.442695, %v913_v38 }
 0x161   :  { %v2619_v15 = vpop.eup %2618  ;;  %v2021_v3 = vrot.slane %v2617_v57, %v3385_v63  ;;  %2638 = vpow2.f32 %v1070_v60  ;;  %v898_v19 = vsub.f32 0.0, %v770_v62  ;;  %v1295_v53 = vadd.f32 1.0, %v2613_v31 }
 0x162   :  { %v2621_v4 = vpop.eup %2620  ;;  %v2091_v52 = vsel %vm1594_vm4, %v2090_v25, %v2086_v2  ;;  %v1947_v0 = vrot.slane %v2619_v15, %v3395_v5  ;;  %v642_v35 = vpop.xlane.xlu1 %641  ;;  %2640 = vpow2.f32 %v1160_v59  ;;  %v884_v58 = vsub.f32 0.0, %v756_v18 }
 0x163   :  { %v2623_v29 = vpop.eup %2622  ;;  %v4070_v43 = vsel %vm1608_vm6, %v2021_v3, %v2017_v13  ;;  %v597_v44 = vpop.xlane.xlu0 %596  ;;  %2642 = vrcp.f32 %v1250_v10  ;;  %v1130_v40 = vmul.f32 1.442695, %v898_v19  ;;  %v869_v34 = vsub.f32 0.0, %v741_v24 }
 0x164   :  { %v2625_v16 = vpop.eup %2624  ;;  %v4073_v1 = vsel %vm1615_vm7, %v1947_v0, %v1943_v45  ;;  %v1280_v36 = vadd.f32 1.0, %v2621_v4  ;;  %v1102_v51 = vmul.f32 1.442695, %v884_v58  ;;  %v786_v48 = vadd.f32 %v3239_v50, %v642_v35 }
 0x165   :  { %v2627_v2 = vpop.eup %2626  ;;  %v2169_v28 = vrot.slane %v2625_v16, %v3363_v47  ;;  %v1266_v17 = vadd.f32 1.0, %v2623_v29  ;;  %2644 = vpow2.f32 %v1130_v40  ;;  %v1072_v27 = vmul.f32 1.442695, %v869_v34 }
 0x166   :  { %v2629_v42 = vpop.eup %2628  ;;  %v2095_v11 = vrot.slane %v2627_v2, %v3376_v56  ;;  %v555_v26 = vpop.xlane.xlu1 %554  ;;  %2646 = vrcp.f32 %v1295_v53  ;;  %v914_v61 = vsub.f32 0.0, %v786_v48  ;;  %v771_v9 = vadd.f32 %v3239_v50, %v597_v44 }
 0x167   :  { %v4079_v22 = vsel %vm1594_vm4, %v2169_v28, %v2165_v30  ;;  %v510_v49 = vpop.xlane.xlu0 %509  ;;  %v2631_v13 = vpop.eup %2630  ;;  %v1251_v23 = vadd.f32 1.0, %v2629_v42  ;;  %2648 = vpow2.f32 %v1102_v51  ;;  %v757_v8 = vadd.f32 %v3239_v50, %v555_v26 }
 0x168   :  { %v4082_v47 = vsel %vm1601_vm5, %v2095_v11, %v2091_v52  ;;  %v2633_v41 = vpop.eup %2632  ;;  %2650 = vrcp.f32 %v1280_v36  ;;  %v1296_v45 = vadd.f32 1.0, %v2631_v13  ;;  %v1162_v54 = vmul.f32 1.442695, %v914_v61 }
 0x169   :  { %v4086_v31 = vpop.eup %2634  ;;  %2652 = vrcp.f32 %v1266_v17  ;;  %v899_v7 = vsub.f32 0.0, %v771_v9  ;;  %v885_v30 = vsub.f32 0.0, %v757_v8  ;;  %v1281_v57 = vadd.f32 1.0, %v2633_v41 }
 0x16a   :  { %v645_v60 = vpop.xlane.xlu1 %644  ;;  %v2637_v33 = vpop.eup %2636  ;;  %2654 = vrcp.f32 %v1251_v23  ;;  %v742_v25 = vadd.f32 %v3239_v50, %v510_v49  ;;  %vm2232_vm1 = vcmask 1044484   ;;  %vm2234_vm2 = vcmask 1045509  }
 0x16b   :  { %v600_v39 = vpop.xlane.xlu0 %599  ;;  %v787_v38 = vadd.f32 %v3239_v50, %v645_v60  ;;  %v2639_v62 = vpop.eup %2638  ;;  %v1267_v15 = vadd.f32 1.0, %v2637_v33  ;;  %2656 = vpow2.f32 %v1072_v27  ;;  %v1132_v10 = vmul.f32 1.442695, %v899_v7 }
 0x16c   :  { %v2641_v3 = vpop.eup %2640  ;;  %2658 = vrcp.f32 %v1296_v45  ;;  %v870_v18 = vsub.f32 0.0, %v742_v25  ;;  %v1104_v4 = vmul.f32 1.442695, %v885_v30  ;;  %v772_v52 = vadd.f32 %v3239_v50, %v600_v39 }
 0x16d   :  { %v4090_v24 = vpop.eup %2642  ;;  %2660 = vpow2.f32 %v1162_v54  ;;  %v1252_v29 = vadd.f32 1.0, %v2639_v62  ;;  %v915_v19 = vsub.f32 0.0, %v787_v38  ;;  %v1297_v16 = vadd.f32 1.0, %v2641_v3 }
 0x16e   :  { %v558_v0 = vpop.xlane.xlu1 %557  ;;  %2662 = vrcp.f32 %v1281_v57  ;;  %v900_v53 = vsub.f32 0.0, %v772_v52  ;;  %v1074_v2 = vmul.f32 1.442695, %v870_v18  ;;  %vm2236_vm3 = vcmask 1046534  }
 0x16f   :  { %v513_v59 = vpop.xlane.xlu0 %512  ;;  %v758_v35 = vadd.f32 %v3239_v50, %v558_v0  ;;  %v2645_v44 = vpop.eup %2644  ;;  %2664 = vrcp.f32 %v1267_v15  ;;  %v1164_v51 = vmul.f32 1.442695, %v915_v19  ;;  %vm2238_vm4 = vcmask 1047559  }
 0x170   :  { %v4094_v58 = vpop.eup %2646  ;;  %2666 = vpow2.f32 %v1132_v10  ;;  %v1282_v40 = vadd.f32 1.0, %v2645_v44  ;;  %v743_v48 = vadd.f32 %v3239_v50, %v513_v59  ;;  %v1134_v26 = vmul.f32 1.442695, %v900_v53 }
 0x171   :  { %v2649_v28 = vpop.eup %2648  ;;  %2668 = vpow2.f32 %v1104_v4  ;;  %v886_v34 = vsub.f32 0.0, %v758_v35 }
 0x172   :  { %v648_v42 = vpop.xlane.xlu1 %647  ;;  %v4096_v36 = vpop.eup %2650  ;;  %2670 = vrcp.f32 %v1252_v29  ;;  %v1268_v61 = vadd.f32 1.0, %v2649_v28  ;;  %v871_v41 = vsub.f32 0.0, %v743_v48 }
 0x173   :  { %v603_v11 = vpop.xlane.xlu0 %602  ;;  %v4099_v17 = vpop.eup %2652  ;;  %2672 = vrcp.f32 %v1297_v16  ;;  %v788_v49 = vadd.f32 %v3239_v50, %v648_v42  ;;  %v1106_v9 = vmul.f32 1.442695, %v886_v34 }
 0x174   :  { %v773_v13 = vadd.f32 %v3239_v50, %v603_v11  ;;  %v4103_v23 = vpop.eup %2654  ;;  %2674 = vpow2.f32 %v1074_v2  ;;  %v1076_v60 = vmul.f32 1.442695, %v871_v41 }
 0x175   :  { %v2657_v27 = vpop.eup %2656  ;;  %2676 = vrcp.f32 %v1282_v40  ;;  %v916_v8 = vsub.f32 0.0, %v788_v49 }
 0x176   :  { %v901_v45 = vsub.f32 0.0, %v773_v13  ;;  %v561_v54 = vpop.xlane.xlu1 %560  ;;  %v4105_v30 = vpop.eup %2658  ;;  %2678 = vpow2.f32 %v1164_v51  ;;  %v1253_v3 = vadd.f32 1.0, %v2657_v27 }
 0x177   :  { %v516_v7 = vpop.xlane.xlu0 %515  ;;  %v2661_v39 = vpop.eup %2660  ;;  %2680 = vpow2.f32 %v1134_v26  ;;  %v1166_v33 = vmul.f32 1.442695, %v916_v8  ;;  %v759_v38 = vadd.f32 %v3239_v50, %v561_v54 }
 0x178   :  { %v4107_v57 = vpop.eup %2662  ;;  %2682 = vrcp.f32 %v1268_v61  ;;  %v1136_v25 = vmul.f32 1.442695, %v901_v45  ;;  %v744_v62 = vadd.f32 %v3239_v50, %v516_v7  ;;  %v1298_v52 = vadd.f32 1.0, %v2661_v39 }
 0x179   :  { %v4111_v15 = vpop.eup %2664  ;;  %2684 = vpow2.f32 %v1106_v9  ;;  %v887_v0 = vsub.f32 0.0, %v759_v38 }
 0x17a   :  { %v651_v10 = vpop.xlane.xlu1 %650  ;;  %v2667_v4 = vpop.eup %2666  ;;  %2686 = vpow2.f32 %v1076_v60  ;;  %v872_v29 = vsub.f32 0.0, %v744_v62 }
 0x17b   :  { %v606_v18 = vpop.xlane.xlu0 %605  ;;  %v2669_v59 = vpop.eup %2668  ;;  %2688 = vpow2.f32 %v1166_v33  ;;  %v1283_v35 = vadd.f32 1.0, %v2667_v4  ;;  %v1108_v44 = vmul.f32 1.442695, %v887_v0  ;;  %v789_v2 = vadd.f32 %v3239_v50, %v651_v10 }
 0x17c   :  { %v4113_v19 = vpop.eup %2670  ;;  %2690 = vpow2.f32 %v1136_v25  ;;  %v1078_v53 = vmul.f32 1.442695, %v872_v29  ;;  %v1269_v42 = vadd.f32 1.0, %v2669_v59  ;;  %v774_v11 = vadd.f32 %v3239_v50, %v606_v18 }
 0x17d   :  { %v4115_v16 = vpop.eup %2672  ;;  %2692 = vrcp.f32 %v1253_v3  ;;  %v917_v26 = vsub.f32 0.0, %v789_v2 }
 0x17e   :  { %v564_v28 = vpop.xlane.xlu1 %563  ;;  %v2675_v34 = vpop.eup %2674  ;;  %2694 = vrcp.f32 %v1298_v52  ;;  %v902_v27 = vsub.f32 0.0, %v774_v11 }
 0x17f   :  { %v519_v40 = vpop.xlane.xlu0 %518  ;;  %v4119_v51 = vpop.eup %2676  ;;  %v1254_v48 = vadd.f32 1.0, %v2675_v34  ;;  %2696 = vpow2.f32 %v1108_v44  ;;  %v760_v49 = vadd.f32 %v3239_v50, %v564_v28  ;;  %v1168_v7 = vmul.f32 1.442695, %v917_v26 }
 0x180   :  { %v2679_v13 = vpop.eup %2678  ;;  %2698 = vrcp.f32 %v1283_v35  ;;  %v745_v60 = vadd.f32 %v3239_v50, %v519_v40  ;;  %v1138_v4 = vmul.f32 1.442695, %v902_v27 }
 0x181   :  { %v2681_v61 = vpop.eup %2680  ;;  %v1299_v41 = vadd.f32 1.0, %v2679_v13  ;;  %2700 = vpow2.f32 %v1078_v53  ;;  %v888_v33 = vsub.f32 0.0, %v760_v49 }
 0x182   :  { %v654_v9 = vpop.xlane.xlu1 %653  ;;  %v4122_v45 = vpop.eup %2682  ;;  %2702 = vrcp.f32 %v1269_v42  ;;  %v1284_v54 = vadd.f32 1.0, %v2681_v61  ;;  %v873_v35 = vsub.f32 0.0, %v745_v60 }
 0x183   :  { %v609_v8 = vpop.xlane.xlu0 %608  ;;  %v2685_v39 = vpop.eup %2684  ;;  %2704 = vrcp.f32 %v1254_v48  ;;  %v790_v25 = vadd.f32 %v3239_v50, %v654_v9  ;;  %v1110_v2 = vmul.f32 1.442695, %v888_v33 }
 0x184   :  { %v2687_v38 = vpop.eup %2686  ;;  %2706 = vrcp.f32 %v1299_v41  ;;  %v1270_v62 = vadd.f32 1.0, %v2685_v39  ;;  %v775_v3 = vadd.f32 %v3239_v50, %v609_v8  ;;  %v1080_v27 = vmul.f32 1.442695, %v873_v35 }
 0x185   :  { %v2689_v10 = vpop.eup %2688  ;;  %2708 = vrcp.f32 %v1284_v54  ;;  %v1255_v18 = vadd.f32 1.0, %v2687_v38  ;;  %v918_v28 = vsub.f32 0.0, %v790_v25 }
 0x186   :  { %v612_v52 = vpop.xlane.xlu1 %611  ;;  %v2691_v59 = vpop.eup %2690  ;;  %v1300_v29 = vadd.f32 1.0, %v2689_v10  ;;  %2710 = vpow2.f32 %v1168_v7  ;;  %v903_v11 = vsub.f32 0.0, %v775_v3 }
 0x187   :  { %v567_v0 = vpop.xlane.xlu0 %566  ;;  %v776_v44 = vadd.f32 %v3239_v50, %v612_v52  ;;  %v4128_v53 = vpop.eup %2692  ;;  %2712 = vrcp.f32 %v1270_v62  ;;  %v1285_v42 = vadd.f32 1.0, %v2691_v59  ;;  %v1170_v54 = vmul.f32 1.442695, %v918_v28 }
 0x188   :  { %v761_v40 = vadd.f32 %v3239_v50, %v567_v0  ;;  %v4131_v34 = vpop.eup %2694  ;;  %2714 = vrcp.f32 %v1255_v18  ;;  %v1140_v33 = vmul.f32 1.442695, %v903_v11 }
 0x189   :  { %v2697_v48 = vpop.eup %2696  ;;  %2716 = vrcp.f32 %v1300_v29  ;;  %v904_v26 = vsub.f32 0.0, %v776_v44 }
 0x18a   :  { %v615_v49 = vpop.xlane.xlu1 %614  ;;  %v4133_v61 = vpop.eup %2698  ;;  %v1271_v41 = vadd.f32 1.0, %v2697_v48  ;;  %2718 = vpow2.f32 %v1138_v4  ;;  %v889_v7 = vsub.f32 0.0, %v761_v40 }
 0x18b   :  { %v657_v13 = vpop.xlane.xlu0 %656  ;;  %v777_v9 = vadd.f32 %v3239_v50, %v615_v49  ;;  %v2701_v8 = vpop.eup %2700  ;;  %2720 = vpow2.f32 %v1110_v2  ;;  %v1142_v62 = vmul.f32 1.442695, %v904_v26 }
 0x18c   :  { %v791_v60 = vadd.f32 %v3239_v50, %v657_v13  ;;  %v4137_v39 = vpop.eup %2702  ;;  %2722 = vrcp.f32 %v1285_v42  ;;  %v1256_v52 = vadd.f32 1.0, %v2701_v8  ;;  %v1112_v29 = vmul.f32 1.442695, %v889_v7 }
 0x18d   :  { %v905_v25 = vsub.f32 0.0, %v777_v9  ;;  %v4139_v38 = vpop.eup %2704  ;;  %2724 = vrcp.f32 %v1271_v41  ;;  %v1952_v7 = vrot.slane %v4090_v24, %v3409_v12 }
 0x18e   :  { %v919_v3 = vsub.f32 0.0, %v791_v60  ;;  %v663_v18 = vpop.xlane.xlu1 %662  ;;  %v4141_v4 = vpop.eup %2706  ;;  %2726 = vpow2.f32 %v1080_v27 }
 0x18f   :  { %v660_v10 = vpop.xlane.xlu0 %659  ;;  %v4144_v59 = vpop.eup %2708  ;;  %2728 = vpow2.f32 %v1170_v54  ;;  %v793_v35 = vadd.f32 %v3239_v50, %v663_v18  ;;  %v1144_v2 = vmul.f32 1.442695, %v905_v25  ;;  %v2026_v54 = vrot.slane %v4086_v31, %v3395_v5 }
 0x190   :  { %v792_v0 = vadd.f32 %v3239_v50, %v660_v10  ;;  %v2711_v44 = vpop.eup %2710  ;;  %2730 = vpow2.f32 %v1140_v33  ;;  %v1172_v42 = vmul.f32 1.442695, %v919_v3  ;;  %v2174_v25 = vrot.slane %v4094_v58, %v3376_v56 }
 0x191   :  { %v4147_v40 = vpop.eup %2712  ;;  %2732 = vpow2.f32 %v1142_v62  ;;  %v921_v11 = vsub.f32 0.0, %v793_v35  ;;  %v1301_v13 = vadd.f32 1.0, %v2711_v44  ;;  %v2100_v3 = vrot.slane %v4096_v36, %v3385_v63 }
 0x192   :  { %v920_v28 = vsub.f32 0.0, %v792_v0  ;;  %v4149_v48 = vpop.eup %2714  ;;  %2734 = vrcp.f32 %v1256_v52  ;;  %v2031_v10 = vrot.slane %v4099_v17, %v3409_v12  ;;  %v1957_v31 = vrot.slane %v4103_v23, %v3419_v21 }
 0x193   :  { %v4151_v49 = vpop.eup %2716  ;;  %2736 = vpow2.f32 %v1112_v29  ;;  %v1176_v9 = vmul.f32 1.442695, %v921_v11  ;;  %v2179_v18 = vrot.slane %v4105_v30, %v3385_v63  ;;  %v2105_v52 = vrot.slane %v4107_v57, %v3395_v5 }
 0x194   :  { %v1174_v26 = vmul.f32 1.442695, %v920_v28  ;;  %v2719_v41 = vpop.eup %2718  ;;  %2738 = vpow2.f32 %v1144_v2  ;;  %v2027_v36 = vsel %vm1615_vm7, %v2026_v54, %v4070_v43  ;;  %v1953_v17 = vsel %vm1622_vm8, %v1952_v7, %v4073_v1 }
 0x195   :  { %v2721_v50 = vpop.eup %2720  ;;  %v1286_v27 = vadd.f32 1.0, %v2719_v41  ;;  %2740 = vpow2.f32 %v1172_v42  ;;  %v2175_v29 = vsel %vm1601_vm5, %v2174_v25, %v4079_v22  ;;  %v2036_v63 = vrot.slane %v4111_v15, %v3419_v21 }
 0x196   :  { %v4153_v8 = vpop.eup %2722  ;;  %v1272_v60 = vadd.f32 1.0, %v2721_v50  ;;  %2742 = vpow2.f32 %v1174_v26  ;;  %v2101_v35 = vsel %vm1608_vm6, %v2100_v3, %v4082_v47  ;;  %v2032_v43 = vsel %vm1622_vm8, %v2031_v10, %v2027_v36 }
 0x197   :  { %v4159_v33 = vpop.eup %2724  ;;  %2744 = vrcp.f32 %v1301_v13  ;;  %v1958_v2 = vsel %vm1629_vm9, %v1957_v31, %v1953_v17  ;;  %v2180_v28 = vsel %vm1608_vm6, %v2179_v18, %v2175_v29  ;;  %v2106_v22 = vsel %vm1615_vm7, %v2105_v52, %v2101_v35 }
 0x198   :  { %v2727_v62 = vpop.eup %2726  ;;  %2746 = vrcp.f32 %v1286_v27  ;;  %v1962_v42 = vrot.slane %v4113_v19, %v3432_v37  ;;  %v2184_v11 = vrot.slane %v4115_v16, %v3395_v5  ;;  %v2037_v13 = vsel %vm1629_vm9, %v2036_v63, %v2032_v43 }
 0x199   :  { %v2729_v24 = vpop.eup %2728  ;;  %v1257_v56 = vadd.f32 1.0, %v2727_v62  ;;  %2748 = vpow2.f32 %v1176_v9  ;;  %v2110_v41 = vrot.slane %v4119_v51, %v3409_v12  ;;  %v2041_v50 = vrot.slane %v4122_v45, %v3432_v37 }
 0x19a   :  { %v2731_v58 = vpop.eup %2730  ;;  %2750 = vrcp.f32 %v1272_v60  ;;  %v1302_v0 = vadd.f32 1.0, %v2729_v24  ;;  %v1967_v19 = vrot.slane %v4128_v53, %v3443_v46  ;;  %v2046_v5 = vrot.slane %v4137_v39, %v3443_v46 }
 0x19b   :  { %v2733_v23 = vpop.eup %2732  ;;  %2752 = vrcp.f32 %v1257_v56  ;;  %v1287_v30 = vadd.f32 1.0, %v2731_v58  ;;  %v2115_v7 = vrot.slane %v4133_v61, %v3419_v21  ;;  %v1972_v51 = vrot.slane %v4139_v38, %v3452_v55 }
 0x19c   :  { %v4181_v57 = vpop.eup %2734  ;;  %2754 = vrcp.f32 %v1302_v0  ;;  %v1288_v1 = vadd.f32 1.0, %v2733_v23  ;;  %v1963_v25 = vsel %vm1636_vm10, %v1962_v42, %v1958_v2  ;;  %v2185_v53 = vsel %vm1615_vm7, %v2184_v11, %v2180_v28 }
 0x19d   :  { %v2737_v44 = vpop.eup %2736  ;;  %2756 = vrcp.f32 %v1287_v30  ;;  %v1977_v39 = vrot.slane %v4149_v48, %v3462_v6  ;;  %v2111_v3 = vsel %vm1622_vm8, %v2110_v41, %v2106_v22  ;;  %v1982_v61 = vrot.slane %v4181_v57, %v3472_v20 }
 0x19e   :  { %v2739_v15 = vpop.eup %2738  ;;  %2758 = vrcp.f32 %v1288_v1  ;;  %v1273_v47 = vadd.f32 1.0, %v2737_v44  ;;  %v2042_v38 = vsel %vm1636_vm10, %v2041_v50, %v2037_v13  ;;  %v2189_v31 = vrot.slane %v4131_v34, %v3409_v12 }
 0x19f   :  { %v2741_v26 = vpop.eup %2740  ;;  %v1289_v27 = vadd.f32 1.0, %v2739_v15  ;;  %v1968_v18 = vsel %vm1643_vm11, %v1967_v19, %v1963_v25  ;;  %v2047_v48 = vsel %vm1643_vm11, %v2046_v5, %v2042_v38  ;;  %v2120_v56 = vrot.slane %v4144_v59, %v3432_v37 }
 0x1a0   :  { %v2743_v9 = vpop.eup %2742  ;;  %2760 = vrcp.f32 %v1273_v47  ;;  %v1303_v16 = vadd.f32 1.0, %v2741_v26  ;;  %v2051_v58 = vrot.slane %v4147_v40, %v3452_v55  ;;  %v1973_v36 = vsel %vm1650_vm12, %v1972_v51, %v1968_v18 }
 0x1a1   :  { %v4202_v54 = vpop.eup %2744  ;;  %2762 = vrcp.f32 %v1289_v27  ;;  %v1304_v45 = vadd.f32 1.0, %v2743_v9  ;;  %v2116_v17 = vsel %vm1629_vm9, %v2115_v7, %v2111_v3  ;;  %v2125_v12 = vrot.slane %v4153_v8, %v3443_v46 }
 0x1a2   :  { %v2747_v60 = vpop.eup %2746  ;;  %2764 = vrcp.f32 %v1303_v16  ;;  %v1978_v34 = vsel %vm1657_vm13, %v1977_v39, %v1973_v36  ;;  %v2194_v59 = vrot.slane %v4141_v4, %v3419_v21  ;;  %v2056_v40 = vrot.slane %v4159_v33, %v3462_v6 }
 0x1a3   :  { %v2749_v62 = vpop.eup %2748  ;;  %2766 = vrcp.f32 %v1304_v45  ;;  %v2130_v63 = vrot.slane %v2747_v60, %v3452_v55  ;;  %v1983_v30 = vsel %vm1664_vm14, %v1982_v61, %v1978_v34  ;;  %v2199_v8 = vrot.slane %v4151_v49, %v3432_v37 }
 0x1a4   :  { %v2751_v10 = vpop.eup %2750  ;;  %v1305_v24 = vadd.f32 1.0, %v2749_v62  ;;  %v2204_v21 = vrot.slane %v4202_v54, %v3443_v46  ;;  %v2121_v4 = vsel %vm1636_vm10, %v2120_v56, %v2116_v17  ;;  %v2052_v28 = vsel %vm1650_vm12, %v2051_v58, %v2047_v48 }
 0x1a5   :  { %v2753_v52 = vpop.eup %2752  ;;  %v2061_v43 = vrot.slane %v2751_v10, %v3472_v20  ;;  %v2126_v37 = vsel %vm1643_vm11, %v2125_v12, %v2121_v4  ;;  %v2190_v49 = vsel %vm1622_vm8, %v2189_v31, %v2185_v53  ;;  %v2057_v42 = vsel %vm1657_vm13, %v2056_v40, %v2052_v28 }
 0x1a6   :  { %v2755_v0 = vpop.eup %2754  ;;  %2768 = vrcp.f32 %v1305_v24  ;;  %v1987_v23 = vrot.slane %v2753_v52, %v3490_v32  ;;  %v2131_v11 = vsel %vm1650_vm12, %v2130_v63, %v2126_v37  ;;  %v2195_v47 = vsel %vm1629_vm9, %v2194_v59, %v2190_v49 }
 0x1a7   :  { %v2757_v29 = vpop.eup %2756  ;;  %v2209_v22 = vrot.slane %v2755_v0, %v3452_v55  ;;  %v2200_v50 = vsel %vm1636_vm10, %v2199_v8, %v2195_v47 }
 0x1a8   :  { %v2759_v57 = vpop.eup %2758  ;;  %v1988_v35 = vsel %vm1671_vm15, %v1987_v23, %v1983_v30  ;;  %v2135_v1 = vrot.slane %v2757_v29, %v3462_v6  ;;  %v2205_v19 = vsel %vm1643_vm11, %v2204_v21, %v2200_v50 }
 0x1a9   :  { %v2140_v33 = vrot.slane %v2759_v57, %v3472_v20  ;;  %v2233_v44 = vsel %vm2232_vm1, %v1988_v35, %v4041_v14  ;;  %v2062_v14 = vsel %vm1664_vm14, %v2061_v43, %v2057_v42  ;;  %v2210_v54 = vsel %vm1650_vm12, %v2209_v22, %v2205_v19 }
 0x1aa   :  { %v2761_v2 = vpop.eup %2760  ;;  %v2136_v13 = vsel %vm1657_vm13, %v2135_v1, %v2131_v11 }
 0x1ab   :  { %v2763_v15 = vpop.eup %2762  ;;  %v2066_v46 = vrot.slane %v2761_v2, %v3490_v32  ;;  %v2141_v9 = vsel %vm1664_vm14, %v2140_v33, %v2136_v13 }
 0x1ac   :  { %v2765_v26 = vpop.eup %2764  ;;  %v2145_v41 = vrot.slane %v2763_v15, %v3490_v32 }
 0x1ad   :  { %v2767_v27 = vpop.eup %2766  ;;  %v2067_v55 = vsel %vm1671_vm15, %v2066_v46, %v2062_v14  ;;  %v2214_v5 = vrot.slane %v2765_v26, %v3462_v6 }
 0x1ae   :  { %v2146_v16 = vsel %vm1671_vm15, %v2145_v41, %v2141_v9  ;;  %v2219_v7 = vrot.slane %v2767_v27, %v3472_v20  ;;  %v2235_v51 = vsel %vm2234_vm2, %v2067_v55, %v2233_v44 }
 0x1af   :  { %v2215_v45 = vsel %vm1657_vm13, %v2214_v5, %v2210_v54  ;;  %v2237_v60 = vsel %vm2236_vm3, %v2146_v16, %v2235_v51 }
 0x1b0   :  { %v2769_v25 = vpop.eup %2768  ;;  %v2220_v53 = vsel %vm1664_vm14, %v2219_v7, %v2215_v45 }
 0x1b1   :  { %v2224_v39 = vrot.slane %v2769_v25, %v3490_v32 }
 0x1b3   :  { %v2225_v6 = vsel %vm1671_vm15, %v2224_v39, %v2220_v53 }
 0x1b4   :  { %v2239_v62 = vsel %vm2238_vm4, %v2225_v6, %v2237_v60 }
 0x1b5   :  { %2241 = vst [vmem:[#allocation3] sm:$0xff] %v2239_v62 }
 0x1b6   :  { %2782 = shalt.err (!%p2779_p4)
}
 0x1b7   :  { %s2783_s30 = scalar_lea.hbm %s4287_s3, 128 }
 0x1b8   :  { %p2784_p5 = scmp.ne.s32.totalorder %s4287_s3, %s2783_s30  ;;  %p2787_p6 = scmp.lt.u32.totalorder %s2783_s30, %s4287_s3 }
 0x1ba   :  { %p2789_p7 = pnand %p2787_p6, %p2784_p5 }
 0x1bc   :  { %2792 = shalt.err (!%p2789_p7)
}
 0x1bd   :  { %2251 = dma.vmem_to_hbm [thread:$0]  %s2249_s26, 128, %s4287_s3, [#allocation4]  }
 0x1be   :  { %2793 = dma.done.wait [#allocation4], 128  }
 0x1bf   :  { %2794 = vsyncadd [#allocation4], 4294967168 }
 0x1c0   :  { %2255 = vsyncpa [#allocation4], 1 }

</bundles_post_ra>
